<compile_context>
chip_gen: v5e
topology: v5e:2x2
jax: 0.10.0
libtpu: 0.0.40
codegen_flags: <defaults>
</compile_context>

<pallas_src>
import functools
import math

import jax
import jax.numpy as jnp
import numpy as np
from jax.experimental import pallas as pl
from jax.experimental.pallas import tpu as pltpu


# ---------------------------------------------------------------------------
# Kernels
# ---------------------------------------------------------------------------

def _proj_kernel(x_ref, w1_ref, dinv_ref, p1_ref):
    """P1 = dinv * (X @ W1).  W1 is VMEM-resident, one dot per row tile."""
    xw = jnp.dot(x_ref[...], w1_ref[...], preferred_element_type=jnp.float32)
    p1_ref[...] = (dinv_ref[...] * xw).astype(p1_ref.dtype)


def _agg1_kernel(a_ref, p1_ref, dinv_ref, b1_ref, w2_ref, q_ref, acc_ref):
    """Layer-1 aggregation with fused epilogue.

    acc = sum_k A[i, k-block] @ P1[k-block]           (A is int8 0/1 counts)
    Q[i] = dinv[i] * ( relu(dinv[i]*acc + b1) @ W2 )  (W2 VMEM-resident)

    P1 is fully VMEM-resident; the k-th row slice is taken in-kernel.
    """
    k = pl.program_id(1)

    @pl.when(k == 0)
    def _():
        acc_ref[...] = jnp.zeros_like(acc_ref)

    tk = a_ref.shape[1]
    row0 = pl.multiple_of(k * tk, 128)
    a_blk = a_ref[...].astype(jnp.float32).astype(jnp.bfloat16)  # exact 0/1
    acc_ref[...] += jnp.dot(a_blk, p1_ref[pl.ds(row0, tk), :],
                            preferred_element_type=jnp.float32)

    @pl.when(k == pl.num_programs(1) - 1)
    def _():
        h = jnp.maximum(dinv_ref[...] * acc_ref[...] + b1_ref[...], 0.0)
        q = jnp.dot(h.astype(w2_ref.dtype), w2_ref[...],
                    preferred_element_type=jnp.float32)
        q_ref[...] = (dinv_ref[...] * q).astype(q_ref.dtype)


def _agg2_kernel(a_ref, q_ref, dinv_ref, b2_ref, o_ref, acc_ref):
    """Layer-2 aggregation: out = dinv * (A @ Q) + b2 (Q VMEM-resident)."""
    k = pl.program_id(1)

    @pl.when(k == 0)
    def _():
        acc_ref[...] = jnp.zeros_like(acc_ref)

    tk = a_ref.shape[1]
    row0 = pl.multiple_of(k * tk, 128)
    a_blk = a_ref[...].astype(jnp.float32).astype(jnp.bfloat16)
    acc_ref[...] += jnp.dot(a_blk, q_ref[pl.ds(row0, tk), :],
                            preferred_element_type=jnp.float32)

    @pl.when(k == pl.num_programs(1) - 1)
    def _():
        o_ref[...] = (dinv_ref[...] * acc_ref[...] + b2_ref[...]
                      ).astype(o_ref.dtype)


# ---------------------------------------------------------------------------
# Tiling / glue
# ---------------------------------------------------------------------------

def _round_up(x, m):
    return ((x + m - 1) // m) * m


def _plan_tiles(n):
    """Pick (tm, tk, n_pad): tk first (cap 1024), then pad N to lcm(tm, tk)."""
    n0 = _round_up(max(n, 1), 128)
    tm = 128 if n0 <= 512 else (256 if n0 <= 2048 else 512)   # >=2 row tiles
    tk = min(1024, n0)
    n_pad = _round_up(n, math.lcm(tm, tk))
    return tm, tk, n_pad


def _vmem_limit_bytes(n_p, tm, tk, f_in_p, f1_p, f2_p):
    """Rough per-kernel VMEM peak (resident slabs + double-buffered streams +
    f32 accumulator), 2x headroom, clamped to [32, 64] MiB (valid on v5e/v6e
    with 128 MiB physical and on v7x with 64 MiB physical)."""
    agg1 = (2 * n_p * f1_p * 2 + 2 * tm * tk + 2 * f1_p * f2_p * 2
            + tm * f1_p * 4 + 2 * tm * f2_p * 2 + 2 * (tm + f1_p) * 4)
    agg2 = (2 * n_p * f2_p * 2 + 2 * tm * tk
            + tm * f2_p * 4 + 2 * tm * f2_p * 4 + 2 * (tm + f2_p) * 4)
    proj = (2 * tm * f_in_p * 2 + 2 * f_in_p * f1_p * 2
            + 2 * tm * f1_p * 2 + 2 * tm * 4)
    est = max(agg1, agg2, proj)
    return int(min(max(2 * est, 32 * 1024 * 1024), 64 * 1024 * 1024))


def precompute_graph(edge_index, num_nodes, n_pad):
    """One-time graph preprocessing (plain JAX glue; cache for static graphs).

    Returns the raw adjacency-with-self-loops as int8 (exact 0/1/counts,
    duplicate edges accumulate like the reference) and dinv = D^{-1/2} as a
    padded (n_pad, 1) f32 column (0 on padded / zero-degree rows).
    """
    src, dst = edge_index[0], edge_index[1]
    a = jnp.zeros((num_nodes, num_nodes), jnp.float32)
    a = a.at[dst, src].add(1.0)                      # A[t, s] = 1 for s -> t
    a = a + jnp.eye(num_nodes, dtype=jnp.float32)    # add self-loops
    deg = jnp.sum(a, axis=1)
    dinv = jnp.where(deg > 0, jax.lax.rsqrt(deg), 0.0)
    pad = n_pad - num_nodes
    a_i8 = jnp.pad(a, ((0, pad), (0, pad))).astype(jnp.int8)
    dinv_p = jnp.pad(dinv, (0, pad)).reshape(-1, 1).astype(jnp.float32)
    return a_i8, dinv_p


@functools.partial(jax.jit, static_argnames=("tm", "tk"))
def _gcn_forward_padded(a_i8, dinv, x_p, w1_p, b1_p, w2_p, b2_p, *, tm, tk):
    n_p, f_in_p = x_p.shape
    f1_p = w1_p.shape[1]
    f2_p = w2_p.shape[1]
    grid_m = n_p // tm
    grid_k = n_p // tk

    vmem_limit = _vmem_limit_bytes(n_p, tm, tk, f_in_p, f1_p, f2_p)
    cp_proj = pltpu.CompilerParams(dimension_semantics=("parallel",),
                                   vmem_limit_bytes=vmem_limit)
    cp_agg = pltpu.CompilerParams(dimension_semantics=("parallel", "arbitrary"),
                                  vmem_limit_bytes=vmem_limit)

    # --- 1) P1 = dinv * (X @ W1), W1 resident, single grid axis ------------
    p1 = pl.pallas_call(
        _proj_kernel,
        out_shape=jax.ShapeDtypeStruct((n_p, f1_p), jnp.bfloat16),
        grid_spec=pltpu.PrefetchScalarGridSpec(
            num_scalar_prefetch=0,
            grid=(grid_m,),
            in_specs=[
                pl.BlockSpec((tm, f_in_p), lambda i: (i, 0)),     # X row tile
                pl.BlockSpec((f_in_p, f1_p), lambda i: (0, 0)),   # W1 resident
                pl.BlockSpec((tm, 1), lambda i: (i, 0)),          # dinv rows
            ],
            out_specs=pl.BlockSpec((tm, f1_p), lambda i: (i, 0)),
        ),
        compiler_params=cp_proj,
    )(x_p, w1_p, dinv)

    # --- 2) Q = dinv * (relu(dinv*(A @ P1) + b1) @ W2), P1/W2 resident -----
    q = pl.pallas_call(
        _agg1_kernel,
        out_shape=jax.ShapeDtypeStruct((n_p, f2_p), jnp.bfloat16),
        grid_spec=pltpu.PrefetchScalarGridSpec(
            num_scalar_prefetch=0,
            grid=(grid_m, grid_k),
            in_specs=[
                pl.BlockSpec((tm, tk), lambda i, k: (i, k)),      # A int8 stream
                pl.BlockSpec((n_p, f1_p), lambda i, k: (0, 0)),   # P1 resident
                pl.BlockSpec((tm, 1), lambda i, k: (i, 0)),       # dinv rows
                pl.BlockSpec((1, f1_p), lambda i, k: (0, 0)),     # b1
                pl.BlockSpec((f1_p, f2_p), lambda i, k: (0, 0)),  # W2 resident
            ],
            out_specs=pl.BlockSpec((tm, f2_p), lambda i, k: (i, 0)),
            scratch_shapes=[pltpu.VMEM((tm, f1_p), jnp.float32)],
        ),
        compiler_params=cp_agg,
    )(a_i8, p1, dinv, b1_p, w2_p)

    # --- 3) out = dinv * (A @ Q) + b2, Q resident ---------------------------
    out_p = pl.pallas_call(
        _agg2_kernel,
        out_shape=jax.ShapeDtypeStruct((n_p, f2_p), jnp.float32),
        grid_spec=pltpu.PrefetchScalarGridSpec(
            num_scalar_prefetch=0,
            grid=(grid_m, grid_k),
            in_specs=[
                pl.BlockSpec((tm, tk), lambda i, k: (i, k)),      # A int8 stream
                pl.BlockSpec((n_p, f2_p), lambda i, k: (0, 0)),   # Q resident
                pl.BlockSpec((tm, 1), lambda i, k: (i, 0)),       # dinv rows
                pl.BlockSpec((1, f2_p), lambda i, k: (0, 0)),     # b2
            ],
            out_specs=pl.BlockSpec((tm, f2_p), lambda i, k: (i, 0)),
            scratch_shapes=[pltpu.VMEM((tm, f2_p), jnp.float32)],
        ),
        compiler_params=cp_agg,
    )(a_i8, q, dinv, b2_p)

    return out_p


def simple_gcn_forward(x, edge_index, w1, b1, w2, b2):
    """out = GCN2(relu(GCN1(x, edge_index)), edge_index)."""
    n, f_in = x.shape
    f1 = w1.shape[1]
    f2 = w2.shape[1]

    tm, tk, n_p = _plan_tiles(n)
    f_in_p = _round_up(f_in, 128)
    f1_p = _round_up(f1, 128)
    f2_p = _round_up(f2, 128)

    # One-time graph preprocessing (hoisted out of the jitted compute path).
    a_i8, dinv = precompute_graph(edge_index, n, n_p)

    x_p = jnp.pad(x.astype(jnp.float32),
                  ((0, n_p - n), (0, f_in_p - f_in))).astype(jnp.bfloat16)
    w1_p = jnp.pad(w1.astype(jnp.float32),
                   ((0, f_in_p - f_in), (0, f1_p - f1))).astype(jnp.bfloat16)
    b1_p = jnp.pad(b1.astype(jnp.float32).reshape(1, -1),
                   ((0, 0), (0, f1_p - f1)))
    w2_p = jnp.pad(w2.astype(jnp.float32),
                   ((0, f1_p - f1), (0, f2_p - f2))).astype(jnp.bfloat16)
    b2_p = jnp.pad(b2.astype(jnp.float32).reshape(1, -1),
                   ((0, 0), (0, f2_p - f2)))

    out_p = _gcn_forward_padded(a_i8, dinv, x_p, w1_p, b1_p, w2_p, b2_p,
                                tm=tm, tk=tk)
    return out_p[:n, :f2]


# ---------------------------------------------------------------------------
# Pure-JAX reference (f32) for a sanity check
# ---------------------------------------------------------------------------

def _reference(x, edge_index, w1, b1, w2, b2):
    n = x.shape[0]
    src, dst = edge_index[0], edge_index[1]
    a = jnp.zeros((n, n), jnp.float32).at[dst, src].add(1.0) + jnp.eye(n)
    deg = a.sum(axis=1)
    dinv = jnp.where(deg > 0, jax.lax.rsqrt(deg), 0.0)
    a_hat = dinv[:, None] * a * dinv[None, :]
    h = jnp.maximum(a_hat @ (x @ w1) + b1, 0.0)
    return a_hat @ (h @ w2) + b2


if __name__ == "__main__":
    key = jax.random.PRNGKey(0)
    k1, k2, k3, k4, k5, k6, k7 = jax.random.split(key, 7)

    # Small Cora-like shapes: 200 nodes, 96 input feats, hidden 32, 8 classes.
    N, F_IN, F_HID, F_OUT = 200, 96, 32, 8
    NUM_E = 400

    x = jax.random.normal(k1, (N, F_IN), jnp.float32)

    # Random undirected graph with no self-loops, symmetrized edge list.
    src = jax.random.randint(k2, (NUM_E,), 0, N)
    off = jax.random.randint(k3, (NUM_E,), 1, N)
    dst = (src + off) % N
    edge_index = jnp.stack([jnp.concatenate([src, dst]),
                            jnp.concatenate([dst, src])]).astype(jnp.int32)

    w1 = jax.random.normal(k4, (F_IN, F_HID), jnp.float32) / jnp.sqrt(F_IN)
    b1 = 0.1 * jax.random.normal(k5, (F_HID,), jnp.float32)
    w2 = jax.random.normal(k6, (F_HID, F_OUT), jnp.float32) / jnp.sqrt(F_HID)
    b2 = 0.1 * jax.random.normal(k7, (F_OUT,), jnp.float32)

    out = simple_gcn_forward(x, edge_index, w1, b1, w2, b2)
    out = jax.block_until_ready(out)

    ref = _reference(x, edge_index, w1, b1, w2, b2)
    # Tighter than before: adjacency is exact int8 and dinv scaling is f32;
    # remaining error is bf16 rounding of X / W / intermediates.
    np.testing.assert_allclose(np.asarray(out), np.asarray(ref),
                               rtol=5e-2, atol=5e-2)

    print("KERNEL_OK")
</pallas_src>

<mosaic_0001>
module attributes {stable_mosaic.version = 11 : i64} {
  func.func @_agg2_kernel(%arg0: i32, %arg1: i32, %arg2: memref<128x256xi8, #tpu.memory_space<vmem>>, %arg3: memref<256x128xbf16, #tpu.memory_space<vmem>>, %arg4: memref<128x1xf32, #tpu.memory_space<vmem>>, %arg5: memref<1x128xf32, #tpu.memory_space<vmem>>, %arg6: memref<128x128xf32, #tpu.memory_space<vmem>>, %arg7: memref<128x128xf32, #tpu.memory_space<vmem>>) attributes {dimension_semantics = [#tpu.dimension_semantics<parallel>, #tpu.dimension_semantics<arbitrary>], iteration_bounds = array<i64: 2, 1>, scalar_prefetch = 0 : i64, scratch_operands = 1 : i64, tpu.core_type = #tpu.core_type<tc>, window_params = [{transform_indices = @transform_0, window_bounds = array<i64: 128, 256>}, {pipeline_mode = #tpu.pipeline_mode<synchronous>, transform_indices = @transform_1, window_bounds = array<i64: 256, 128>}, {transform_indices = @transform_2, window_bounds = array<i64: 128, 1>}, {pipeline_mode = #tpu.pipeline_mode<synchronous>, transform_indices = @transform_3, window_bounds = array<i64: 1, 128>}, {transform_indices = @transform_4, window_bounds = array<i64: 128, 128>}]} {
    %c0_i32 = arith.constant 0 : i32
    %0 = arith.cmpi eq, %arg1, %c0_i32 : i32
    %1 = arith.extui %0 : i1 to i32
    %c0_i32_0 = arith.constant 0 : i32
    %2 = arith.cmpi ne, %1, %c0_i32_0 : i32
    scf.if %2 {
      %cst_9 = arith.constant 0.000000e+00 : f32
      %17 = vector.broadcast %cst_9 : f32 to vector<128x128xf32>
      %c0_10 = arith.constant 0 : index
      %c0_11 = arith.constant 0 : index
      %18 = vector.load %arg7[%c0_10, %c0_11] : memref<128x128xf32, #tpu.memory_space<vmem>>, vector<128x128xf32>
      tpu.vector_store %arg7[%c0_10, %c0_11], %17 {strides = array<i32>} : memref<128x128xf32, #tpu.memory_space<vmem>>, vector<128x128xf32>,
    } else {
    }
    %c256_i32 = arith.constant 256 : i32
    %3 = arith.muli %arg1, %c256_i32 : i32
    %4 = tpu.assume_multiple %3, 128 : i32
    %c0 = arith.constant 0 : index
    %c0_1 = arith.constant 0 : index
    %5 = vector.load %arg2[%c0, %c0_1] : memref<128x256xi8, #tpu.memory_space<vmem>>, vector<128x256xi8>
    %6 = arith.sitofp %5 : vector<128x256xi8> to vector<128x256xf32>
    %7 = arith.truncf %6 : vector<128x256xf32> to vector<128x256xbf16>
    %c0_2 = arith.constant 0 : index
    %c0_3 = arith.constant 0 : index
    %8 = vector.load %arg7[%c0_2, %c0_3] : memref<128x128xf32, #tpu.memory_space<vmem>>, vector<128x128xf32>
    %9 = arith.index_cast %4 : i32 to index
    %c0_4 = arith.constant 0 : index
    %10 = vector.load %arg3[%9, %c0_4] : memref<256x128xbf16, #tpu.memory_space<vmem>>, vector<256x128xbf16>
    %cst = arith.constant dense<0.000000e+00> : vector<128x128xf32>
    %11 = tpu.matmul %7, %10, %cst {dimension_numbers = #tpu.dot_dimension_numbers<[1], [0], [0], [1], [0, 0, 1, 1], [], []>} : vector<128x256xbf16>, vector<256x128xbf16>, vector<128x128xf32> -> vector<128x128xf32>
    %12 = arith.addf %8, %11 : vector<128x128xf32>
    %c0_5 = arith.constant 0 : index
    %c0_6 = arith.constant 0 : index
    %13 = vector.load %arg7[%c0_5, %c0_6] : memref<128x128xf32, #tpu.memory_space<vmem>>, vector<128x128xf32>
    tpu.vector_store %arg7[%c0_5, %c0_6], %12 {strides = array<i32>} : memref<128x128xf32, #tpu.memory_space<vmem>>, vector<128x128xf32>,
    %c0_i32_7 = arith.constant 0 : i32
    %14 = arith.cmpi eq, %arg1, %c0_i32_7 : i32
    %15 = arith.extui %14 : i1 to i32
    %c0_i32_8 = arith.constant 0 : i32
    %16 = arith.cmpi ne, %15, %c0_i32_8 : i32
    scf.if %16 {
      %c0_9 = arith.constant 0 : index
      %c0_10 = arith.constant 0 : index
      %17 = vector.load %arg4[%c0_9, %c0_10] : memref<128x1xf32, #tpu.memory_space<vmem>>, vector<128x1xf32>
      %c0_11 = arith.constant 0 : index
      %c0_12 = arith.constant 0 : index
      %18 = vector.load %arg7[%c0_11, %c0_12] : memref<128x128xf32, #tpu.memory_space<vmem>>, vector<128x128xf32>
      %19 = vector.broadcast %17 : vector<128x1xf32> to vector<128x128xf32>
      %20 = arith.mulf %19, %18 : vector<128x128xf32>
      %c0_13 = arith.constant 0 : index
      %c0_14 = arith.constant 0 : index
      %21 = vector.load %arg5[%c0_13, %c0_14] : memref<1x128xf32, #tpu.memory_space<vmem>>, vector<1x128xf32>
      %22 = vector.broadcast %21 : vector<1x128xf32> to vector<128x128xf32>
      %23 = arith.addf %20, %22 : vector<128x128xf32>
      %c0_15 = arith.constant 0 : index
      %c0_16 = arith.constant 0 : index
      %24 = vector.load %arg6[%c0_15, %c0_16] : memref<128x128xf32, #tpu.memory_space<vmem>>, vector<128x128xf32>
      tpu.vector_store %arg6[%c0_15, %c0_16], %23 {strides = array<i32>} : memref<128x128xf32, #tpu.memory_space<vmem>>, vector<128x128xf32>,
    } else {
    }
    return
  }
  func.func @transform_0(%arg0: i32, %arg1: i32) -> (i32, i32) {
    %c0_i32 = arith.constant 0 : i32
    return %arg0, %arg1 : i32, i32
  }
  func.func @transform_1(%arg0: i32, %arg1: i32) -> (i32, i32) {
    %c0_i32 = arith.constant 0 : i32
    %c0_i32_0 = arith.constant 0 : i32
    %c0_i32_1 = arith.constant 0 : i32
    return %c0_i32, %c0_i32_0 : i32, i32
  }
  func.func @transform_2(%arg0: i32, %arg1: i32) -> (i32, i32) {
    %c0_i32 = arith.constant 0 : i32
    %c0_i32_0 = arith.constant 0 : i32
    return %arg0, %c0_i32 : i32, i32
  }
  func.func @transform_3(%arg0: i32, %arg1: i32) -> (i32, i32) {
    %c0_i32 = arith.constant 0 : i32
    %c0_i32_0 = arith.constant 0 : i32
    %c0_i32_1 = arith.constant 0 : i32
    return %c0_i32, %c0_i32_0 : i32, i32
  }
  func.func @transform_4(%arg0: i32, %arg1: i32) -> (i32, i32) {
    %c0_i32 = arith.constant 0 : i32
    %c0_i32_0 = arith.constant 0 : i32
    return %arg0, %c0_i32 : i32, i32
  }
}

module attributes {stable_mosaic.version = 11 : i64} {
  func.func @_proj_kernel(%arg0: i32, %arg1: memref<128x128xbf16, #tpu.memory_space<vmem>>, %arg2: memref<128x128xbf16, #tpu.memory_space<vmem>>, %arg3: memref<128x1xf32, #tpu.memory_space<vmem>>, %arg4: memref<128x128xbf16, #tpu.memory_space<vmem>>) attributes {dimension_semantics = [#tpu.dimension_semantics<parallel>], iteration_bounds = array<i64: 2>, scalar_prefetch = 0 : i64, scratch_operands = 0 : i64, tpu.core_type = #tpu.core_type<tc>, window_params = [{transform_indices = @transform_0, window_bounds = array<i64: 128, 128>}, {pipeline_mode = #tpu.pipeline_mode<synchronous>, transform_indices = @transform_1, window_bounds = array<i64: 128, 128>}, {transform_indices = @transform_2, window_bounds = array<i64: 128, 1>}, {transform_indices = @transform_3, window_bounds = array<i64: 128, 128>}]} {
    %c0 = arith.constant 0 : index
    %c0_0 = arith.constant 0 : index
    %0 = vector.load %arg1[%c0, %c0_0] : memref<128x128xbf16, #tpu.memory_space<vmem>>, vector<128x128xbf16>
    %c0_1 = arith.constant 0 : index
    %c0_2 = arith.constant 0 : index
    %1 = vector.load %arg2[%c0_1, %c0_2] : memref<128x128xbf16, #tpu.memory_space<vmem>>, vector<128x128xbf16>
    %cst = arith.constant dense<0.000000e+00> : vector<128x128xf32>
    %2 = tpu.matmul %0, %1, %cst {dimension_numbers = #tpu.dot_dimension_numbers<[1], [0], [0], [1], [0, 0, 1, 1], [], []>} : vector<128x128xbf16>, vector<128x128xbf16>, vector<128x128xf32> -> vector<128x128xf32>
    %c0_3 = arith.constant 0 : index
    %c0_4 = arith.constant 0 : index
    %3 = vector.load %arg3[%c0_3, %c0_4] : memref<128x1xf32, #tpu.memory_space<vmem>>, vector<128x1xf32>
    %4 = vector.broadcast %3 : vector<128x1xf32> to vector<128x128xf32>
    %5 = arith.mulf %4, %2 : vector<128x128xf32>
    %6 = arith.truncf %5 : vector<128x128xf32> to vector<128x128xbf16>
    %c0_5 = arith.constant 0 : index
    %c0_6 = arith.constant 0 : index
    %7 = vector.load %arg4[%c0_5, %c0_6] : memref<128x128xbf16, #tpu.memory_space<vmem>>, vector<128x128xbf16>
    tpu.vector_store %arg4[%c0_5, %c0_6], %6 {strides = array<i32>} : memref<128x128xbf16, #tpu.memory_space<vmem>>, vector<128x128xbf16>,
    return
  }
  func.func @transform_0(%arg0: i32) -> (i32, i32) {
    %c0_i32 = arith.constant 0 : i32
    %c0_i32_0 = arith.constant 0 : i32
    return %arg0, %c0_i32 : i32, i32
  }
  func.func @transform_1(%arg0: i32) -> (i32, i32) {
    %c0_i32 = arith.constant 0 : i32
    %c0_i32_0 = arith.constant 0 : i32
    %c0_i32_1 = arith.constant 0 : i32
    return %c0_i32, %c0_i32_0 : i32, i32
  }
  func.func @transform_2(%arg0: i32) -> (i32, i32) {
    %c0_i32 = arith.constant 0 : i32
    %c0_i32_0 = arith.constant 0 : i32
    return %arg0, %c0_i32 : i32, i32
  }
  func.func @transform_3(%arg0: i32) -> (i32, i32) {
    %c0_i32 = arith.constant 0 : i32
    %c0_i32_0 = arith.constant 0 : i32
    return %arg0, %c0_i32 : i32, i32
  }
}

module attributes {stable_mosaic.version = 11 : i64} {
  func.func @_agg1_kernel(%arg0: i32, %arg1: i32, %arg2: memref<128x256xi8, #tpu.memory_space<vmem>>, %arg3: memref<256x128xbf16, #tpu.memory_space<vmem>>, %arg4: memref<128x1xf32, #tpu.memory_space<vmem>>, %arg5: memref<1x128xf32, #tpu.memory_space<vmem>>, %arg6: memref<128x128xbf16, #tpu.memory_space<vmem>>, %arg7: memref<128x128xbf16, #tpu.memory_space<vmem>>, %arg8: memref<128x128xf32, #tpu.memory_space<vmem>>) attributes {dimension_semantics = [#tpu.dimension_semantics<parallel>, #tpu.dimension_semantics<arbitrary>], iteration_bounds = array<i64: 2, 1>, scalar_prefetch = 0 : i64, scratch_operands = 1 : i64, tpu.core_type = #tpu.core_type<tc>, window_params = [{transform_indices = @transform_0, window_bounds = array<i64: 128, 256>}, {pipeline_mode = #tpu.pipeline_mode<synchronous>, transform_indices = @transform_1, window_bounds = array<i64: 256, 128>}, {transform_indices = @transform_2, window_bounds = array<i64: 128, 1>}, {pipeline_mode = #tpu.pipeline_mode<synchronous>, transform_indices = @transform_3, window_bounds = array<i64: 1, 128>}, {pipeline_mode = #tpu.pipeline_mode<synchronous>, transform_indices = @transform_4, window_bounds = array<i64: 128, 128>}, {transform_indices = @transform_5, window_bounds = array<i64: 128, 128>}]} {
    %c0_i32 = arith.constant 0 : i32
    %0 = arith.cmpi eq, %arg1, %c0_i32 : i32
    %1 = arith.extui %0 : i1 to i32
    %c0_i32_0 = arith.constant 0 : i32
    %2 = arith.cmpi ne, %1, %c0_i32_0 : i32
    scf.if %2 {
      %cst_9 = arith.constant 0.000000e+00 : f32
      %17 = vector.broadcast %cst_9 : f32 to vector<128x128xf32>
      %c0_10 = arith.constant 0 : index
      %c0_11 = arith.constant 0 : index
      %18 = vector.load %arg8[%c0_10, %c0_11] : memref<128x128xf32, #tpu.memory_space<vmem>>, vector<128x128xf32>
      tpu.vector_store %arg8[%c0_10, %c0_11], %17 {strides = array<i32>} : memref<128x128xf32, #tpu.memory_space<vmem>>, vector<128x128xf32>,
    } else {
    }
    %c256_i32 = arith.constant 256 : i32
    %3 = arith.muli %arg1, %c256_i32 : i32
    %4 = tpu.assume_multiple %3, 128 : i32
    %c0 = arith.constant 0 : index
    %c0_1 = arith.constant 0 : index
    %5 = vector.load %arg2[%c0, %c0_1] : memref<128x256xi8, #tpu.memory_space<vmem>>, vector<128x256xi8>
    %6 = arith.sitofp %5 : vector<128x256xi8> to vector<128x256xf32>
    %7 = arith.truncf %6 : vector<128x256xf32> to vector<128x256xbf16>
    %c0_2 = arith.constant 0 : index
    %c0_3 = arith.constant 0 : index
    %8 = vector.load %arg8[%c0_2, %c0_3] : memref<128x128xf32, #tpu.memory_space<vmem>>, vector<128x128xf32>
    %9 = arith.index_cast %4 : i32 to index
    %c0_4 = arith.constant 0 : index
    %10 = vector.load %arg3[%9, %c0_4] : memref<256x128xbf16, #tpu.memory_space<vmem>>, vector<256x128xbf16>
    %cst = arith.constant dense<0.000000e+00> : vector<128x128xf32>
    %11 = tpu.matmul %7, %10, %cst {dimension_numbers = #tpu.dot_dimension_numbers<[1], [0], [0], [1], [0, 0, 1, 1], [], []>} : vector<128x256xbf16>, vector<256x128xbf16>, vector<128x128xf32> -> vector<128x128xf32>
    %12 = arith.addf %8, %11 : vector<128x128xf32>
    %c0_5 = arith.constant 0 : index
    %c0_6 = arith.constant 0 : index
    %13 = vector.load %arg8[%c0_5, %c0_6] : memref<128x128xf32, #tpu.memory_space<vmem>>, vector<128x128xf32>
    tpu.vector_store %arg8[%c0_5, %c0_6], %12 {strides = array<i32>} : memref<128x128xf32, #tpu.memory_space<vmem>>, vector<128x128xf32>,
    %c0_i32_7 = arith.constant 0 : i32
    %14 = arith.cmpi eq, %arg1, %c0_i32_7 : i32
    %15 = arith.extui %14 : i1 to i32
    %c0_i32_8 = arith.constant 0 : i32
    %16 = arith.cmpi ne, %15, %c0_i32_8 : i32
    scf.if %16 {
      %c0_9 = arith.constant 0 : index
      %c0_10 = arith.constant 0 : index
      %17 = vector.load %arg4[%c0_9, %c0_10] : memref<128x1xf32, #tpu.memory_space<vmem>>, vector<128x1xf32>
      %c0_11 = arith.constant 0 : index
      %c0_12 = arith.constant 0 : index
      %18 = vector.load %arg8[%c0_11, %c0_12] : memref<128x128xf32, #tpu.memory_space<vmem>>, vector<128x128xf32>
      %19 = vector.broadcast %17 : vector<128x1xf32> to vector<128x128xf32>
      %20 = arith.mulf %19, %18 : vector<128x128xf32>
      %c0_13 = arith.constant 0 : index
      %c0_14 = arith.constant 0 : index
      %21 = vector.load %arg5[%c0_13, %c0_14] : memref<1x128xf32, #tpu.memory_space<vmem>>, vector<1x128xf32>
      %22 = vector.broadcast %21 : vector<1x128xf32> to vector<128x128xf32>
      %23 = arith.addf %20, %22 : vector<128x128xf32>
      %cst_15 = arith.constant 0.000000e+00 : f32
      %24 = vector.broadcast %cst_15 : f32 to vector<128x128xf32>
      %25 = arith.maximumf %23, %24 : vector<128x128xf32>
      %26 = arith.truncf %25 : vector<128x128xf32> to vector<128x128xbf16>
      %c0_16 = arith.constant 0 : index
      %c0_17 = arith.constant 0 : index
      %27 = vector.load %arg6[%c0_16, %c0_17] : memref<128x128xbf16, #tpu.memory_space<vmem>>, vector<128x128xbf16>
      %cst_18 = arith.constant dense<0.000000e+00> : vector<128x128xf32>
      %28 = tpu.matmul %26, %27, %cst_18 {dimension_numbers = #tpu.dot_dimension_numbers<[1], [0], [0], [1], [0, 0, 1, 1], [], []>} : vector<128x128xbf16>, vector<128x128xbf16>, vector<128x128xf32> -> vector<128x128xf32>
      %c0_19 = arith.constant 0 : index
      %c0_20 = arith.constant 0 : index
      %29 = vector.load %arg4[%c0_19, %c0_20] : memref<128x1xf32, #tpu.memory_space<vmem>>, vector<128x1xf32>
      %30 = vector.broadcast %29 : vector<128x1xf32> to vector<128x128xf32>
      %31 = arith.mulf %30, %28 : vector<128x128xf32>
      %32 = arith.truncf %31 : vector<128x128xf32> to vector<128x128xbf16>
      %c0_21 = arith.constant 0 : index
      %c0_22 = arith.constant 0 : index
      %33 = vector.load %arg7[%c0_21, %c0_22] : memref<128x128xbf16, #tpu.memory_space<vmem>>, vector<128x128xbf16>
      tpu.vector_store %arg7[%c0_21, %c0_22], %32 {strides = array<i32>} : memref<128x128xbf16, #tpu.memory_space<vmem>>, vector<128x128xbf16>,
    } else {
    }
    return
  }
  func.func @transform_0(%arg0: i32, %arg1: i32) -> (i32, i32) {
    %c0_i32 = arith.constant 0 : i32
    return %arg0, %arg1 : i32, i32
  }
  func.func @transform_1(%arg0: i32, %arg1: i32) -> (i32, i32) {
    %c0_i32 = arith.constant 0 : i32
    %c0_i32_0 = arith.constant 0 : i32
    %c0_i32_1 = arith.constant 0 : i32
    return %c0_i32, %c0_i32_0 : i32, i32
  }
  func.func @transform_2(%arg0: i32, %arg1: i32) -> (i32, i32) {
    %c0_i32 = arith.constant 0 : i32
    %c0_i32_0 = arith.constant 0 : i32
    return %arg0, %c0_i32 : i32, i32
  }
  func.func @transform_3(%arg0: i32, %arg1: i32) -> (i32, i32) {
    %c0_i32 = arith.constant 0 : i32
    %c0_i32_0 = arith.constant 0 : i32
    %c0_i32_1 = arith.constant 0 : i32
    return %c0_i32, %c0_i32_0 : i32, i32
  }
  func.func @transform_4(%arg0: i32, %arg1: i32) -> (i32, i32) {
    %c0_i32 = arith.constant 0 : i32
    %c0_i32_0 = arith.constant 0 : i32
    %c0_i32_1 = arith.constant 0 : i32
    return %c0_i32, %c0_i32_0 : i32, i32
  }
  func.func @transform_5(%arg0: i32, %arg1: i32) -> (i32, i32) {
    %c0_i32 = arith.constant 0 : i32
    %c0_i32_0 = arith.constant 0 : i32
    return %arg0, %c0_i32 : i32, i32
  }
}

</mosaic_0001>

<bundles_post_ra>
// kernel: _gcn_forward_padded.5
= control target key start
LH: loop header
LB: loop body
LE: loop exit
PB: predicated region body
PF: predicated region fallthrough
CT: control target
= control target key end

     0   :  { %9 = vsyncpa [#allocation4], 0  ;;  %s1458_s0 = inlined_call_operand.vmem [shape: s8[256,256], index: 0, kind: input, shape index: {}]   ;;  %s1459_s1 = inlined_call_operand.vmem [shape: bf16[256,128], index: 1, kind: input, shape index: {}]   ;;  %s1460_s2 = inlined_call_operand.vmem [shape: f32[256,1], index: 2, kind: input, shape index: {}]   ;;  %s1461_s3 = inlined_call_operand.vmem [shape: f32[1,128], index: 3, kind: input, shape index: {}]   ;;  %s1462_s4 = inlined_call_operand.hbm [shape: f32[256,128], index: 4, kind: output, shape index: {}]  }
   0x1   :  { %11 = vsyncpa [#allocation4 + $0x1], 0  ;;  %s1196_s15 = smov 0   ;;  %s1198_s16 = smov 0  }
   0x2   :  { %s1200_s17 = smov 0   ;;  %s1202_s18 = smov 0  }
   0x3   :  { %s1204_s19 = smov 0   ;;  %s1206_s20 = smov 0  }
   0x4 LB: > { %s912_s21 = sadd.s32 4294967295, %s1166_s20   ;;  %s913_s22 = sadd.s32 4294967294, %s1166_s20   ;;  %s1166_s20 = sphi %s1206_s20, %s17_s20   ;;  %s1162_s19 = sphi %s1204_s19, %s1470_s19   ;;  %s1158_s18 = sphi %s1202_s18, %s1469_s18   ;;  %s1154_s17 = sphi %s1200_s17, %s1468_s17   ;;  %s1150_s16 = sphi %s1198_s16, %s1467_s16   ;;  %s1146_s15 = sphi %s1196_s15, %s1466_s15  }
   0x5   : > { %s29_s23 = sadd.s32 1, %s1162_s19  ;;  %s132_s24 = sadd.s32 1, %s1154_s17 }
   0x6   : > { %p31_p0 = scmp.ge.s32.totalorder %s29_s23, 2  ;;  %p142_p1 = scmp.ne.s32.totalorder %s1154_s17, %s1150_s16 }
   0x7   : > { %p143_p2 = scmp.eq.s32.totalorder %s912_s21, 1  ;;  %p148_p3 = scmp.ne.s32.totalorder %s1150_s16, %s1146_s15 }
   0x8   : > { %s1472_s23 = smov (%p31_p0, %s29_s23), 0  ;;  %p149_p5 = scmp.eq.s32.totalorder %s913_s22, 1 }
   0x9   : > { %p1236_p4 = por %p143_p2, %p142_p1  ;;  %s129_s26 = ssub.s32 %s1162_s19, %s1472_s23 }
   0xa   : > { %p916_p6 = scmp.ge.s32.totalorder %s1166_s20, 1  ;;  %p130_p7 = scmp.eq.s32.totalorder %s129_s26, 0 }
   0xb   : > { %p1243_p8 = por %p149_p5, %p148_p3  ;;  %p197_p9 = scmp.lt.s32.totalorder %s1166_s20, 3 }
   0xc   : > { %s1249_s28 = scalar_select %p130_p7, %s1154_s17, %s132_s24  }
   0xd   : > { %p198_p10 = pnand %p916_p6, %p197_p9 }
   0xe   : > { %s921_s7 = sshll.u32 (!%p198_p10), %s1158_s18, 4  ;;  %s918_s8 = sshll.u32 (!%p198_p10), %s1158_s18, 2 }
   0xf   : > { %201 = sbr.rel (%p198_p10) target bundleno = 252 (0xfc), region = 36  ;;  %p246_p11 = scmp.lt.s32.totalorder (!%p198_p10), %s921_s7, 31 }
  0x10   : > { %p1262_p12 = scmp.lt.s32.totalorder (!%p198_p10), %s918_s8, 7  ;;  %s1009_s30 = sshll.u32 (!%p198_p10), %s1158_s18, 7 }
  0x11   : > { %s1108_s21 = scalar_lea.hbm (!%p198_p10), %s1462_s4, 256 }
  0x14   : > { %v1000_v0 = vld [vmem:[%s1459_s1 + $0x38] sm:$0xff]  ;;  %v1168_v2 = vmov 0   ;;  %v999_v3 = vld [vmem:[%s1459_s1 + $0x30] sm:$0xff]  ;;  %s1474_s7 = smov (!%p246_p11, %s921_s7), 31  ;;  %v998_v5 = vld [vmem:[%s1459_s1 + $0x28] sm:$0xff]  ;;  %s1476_s8 = smov (!%p1262_p12, %s918_s8), 7 }
  0x15   : > { %v1008_v1 = vld [vmem:[%s1459_s1 + $0x78] sm:$0xff]  ;;  %1084 = vset.pattern.permute.xlu0 %v1168_v2  ;;  %1085 = vset.pattern.permute.xlu1 %v1168_v2  ;;  %v1007_v4 = vld [vmem:[%s1459_s1 + $0x70] sm:$0xff]  ;;  %s922_s14 = sshll.u32 %s1474_s7, 3  ;;  %v1006_v6 = vld [vmem:[%s1459_s1 + $0x68] sm:$0xff]  ;;  %s992_s12 = sshll.u32 %s1476_s8, 4 }
  0x16   : > { %509 = vmatpush.bf16.msra.mxu0 %v1000_v0  ;;  %1010 = vmatpush.bf16.msra.mxu2 %v1000_v0  ;;  %s1275_s29 = scalar_lea.vmem %s1460_s2, %s922_s14  ;;  %v997_v9 = vld [vmem:[%s1459_s1 + $0x20] sm:$0xff]  ;;  %v996_v12 = vld [vmem:[%s1459_s1 + $0x18] sm:$0xff]  ;;  %s1297_s22 = scalar_lea.vmem %s1458_s0, %s992_s12  ;;  %v995_v14 = vld [vmem:[%s1459_s1 + $0x10] sm:$0xff] }
  0x17   : > { %558 = vmatpush.bf16.msra.mxu1 %v1008_v1  ;;  %1018 = vmatpush.bf16.msra.mxu3 %v1008_v1  ;;  %v642_v7 = vld [vmem:[%s1275_s29] sm:$0xff]  ;;  %v644_v8 = vld [vmem:[%s1275_s29 + $0x10] sm:$0xff]  ;;  %v643_v11 = vld [vmem:[%s1275_s29 + $0x8] sm:$0xff]  ;;  %s818_s7 = scalar_lea.hbm %s1462_s4, %s1009_s30 }
  0x18   : > { %1086 = vset.pattern.permute.xlu2 %v1168_v2  ;;  %676 = vperm.xlu0 %1084, %v642_v7   ;;  %v1005_v10 = vld [vmem:[%s1459_s1 + $0x60] sm:$0xff]  ;;  %v1004_v13 = vld [vmem:[%s1459_s1 + $0x58] sm:$0xff]  ;;  %v1003_v19 = vld [vmem:[%s1459_s1 + $0x50] sm:$0xff]  ;;  %s821_s18 = sshll.u32 %s818_s7, 4  ;;  %s822_s18 = int_to_ptr.hbm [resolvable:$true] %s821_s18 }
  0x19   : > { %686 = vperm.xlu1 %1085, %v644_v8   ;;  %v1306_v15 = vld [vmem:[%s1297_s22] sm:$0xff]  ;;  %v645_v17 = vld [vmem:[%s1275_s29 + $0x18] sm:$0xff]  ;;  %v1317_v20 = vld [vmem:[%s1297_s22 + $0x8] sm:$0xff]  ;;  %s1102_s12 = sshra.s32 %s822_s18, 4  ;;  %s1103_s12 = int_to_ptr.hbm [resolvable:$true] %s1102_s12 }
  0x1a   : > { %510 = vmatpush.bf16.msra.mxu0 %v999_v3  ;;  %1011 = vmatpush.bf16.msra.mxu2 %v999_v3  ;;  %v1309_v16 = vld [vmem:[%s1297_s22 + $0x20] sm:$0xff]  ;;  %v1320_v21 = vld [vmem:[%s1297_s22 + $0x28] sm:$0xff]  ;;  %v281_v22 = vunpack.c.0.s8 %v1306_v15  ;;  %v283_v23 = vunpack.c.1.s8 %v1306_v15  ;;  %v648_v26 = vld [vmem:[%s1275_s29 + $0x30] sm:$0xff]  ;;  %v282_v28 = vunpack.c.0.s8 %v1317_v20  ;;  %v284_v29 = vunpack.c.1.s8 %v1317_v20  ;;  %s1104_s11 = scalar_lea.hbm %s1103_s12, 128  ;;  %p1109_p2 = scmp.lt.s32.totalorder %s1103_s12, %s1462_s4 }
  0x1b   : > { %559 = vmatpush.bf16.msra.mxu1 %v1007_v4  ;;  %1019 = vmatpush.bf16.msra.mxu3 %v1007_v4  ;;  %v646_v18 = vld [vmem:[%s1275_s29 + $0x20] sm:$0xff]  ;;  %v297_v24 = vunpack.c.0.s8 %v1309_v16  ;;  %v299_v25 = vunpack.c.1.s8 %v1309_v16  ;;  %v994_v27 = vld [vmem:[%s1459_s1 + $0x8] sm:$0xff]  ;;  %v298_v30 = vunpack.c.0.s8 %v1320_v21  ;;  %v300_v31 = vunpack.c.1.s8 %v1320_v21  ;;  %v649_v37 = vld [vmem:[%s1275_s29 + $0x38] sm:$0xff]  ;;  %p1105_p13 = scmp.ne.s32.totalorder %s1103_s12, %s1104_s11  ;;  %p1110_p3 = scmp.lt.s32.totalorder %s1108_s21, %s1104_s11 }
  0x1c   : > { %696 = vperm.xlu2 %1086, %v646_v18   ;;  %v1002_v32 = vld [vmem:[%s1459_s1 + $0x48] sm:$0xff]  ;;  %v313_v33 = vcvt.s32.f32 %v281_v22  ;;  %v315_v34 = vcvt.s32.f32 %v283_v23  ;;  %v993_v38 = vld [vmem:[%s1459_s1] sm:$0xff]  ;;  %v314_v39 = vcvt.s32.f32 %v282_v28  ;;  %v316_v40 = vcvt.s32.f32 %v284_v29  ;;  %v652_v50 = vld [vmem:[%s1275_s29 + $0x50] sm:$0xff] }
  0x1d   : > { %v329_v35 = vcvt.s32.f32 %v297_v24  ;;  %v331_v36 = vcvt.s32.f32 %v299_v25  ;;  %v330_v41 = vcvt.s32.f32 %v298_v30  ;;  %v332_v42 = vcvt.s32.f32 %v300_v31  ;;  %v1001_v43 = vld [vmem:[%s1459_s1 + $0x40] sm:$0xff]  ;;  %v651_v46 = vld [vmem:[%s1275_s29 + $0x48] sm:$0xff]  ;;  %v657_v8 = vld [vmem:[%s1275_s29 + $0x78] sm:$0xff]  ;;  %p1106_p0 = pnand %p1105_p13, %p1236_p4  ;;  %p1111_p5 = por %p1110_p3, %p1109_p2 }
  0x1e   : > { %511 = vmatpush.bf16.msra.mxu0 %v998_v5  ;;  %1012 = vmatpush.bf16.msra.mxu2 %v998_v5  ;;  %v345_v44 = vpack.c.bf16 %v315_v34, %v313_v33  ;;  %v346_v47 = vpack.c.bf16 %v316_v40, %v314_v39  ;;  %v647_v49 = vld [vmem:[%s1275_s29 + $0x28] sm:$0xff]  ;;  %v285_v51 = vunpack.c.2.s8 %v1306_v15  ;;  %v287_v52 = vunpack.c.3.s8 %v1306_v15  ;;  %v654_v55 = vld [vmem:[%s1275_s29 + $0x60] sm:$0xff]  ;;  %v280_v15 = vld [vmem:[%s1297_s22 + $0x38] sm:$0xff] }
  0x1f   : > { %560 = vmatpush.bf16.msra.mxu1 %v1006_v6  ;;  %1020 = vmatpush.bf16.msra.mxu3 %v1006_v6  ;;  %v353_v45 = vpack.c.bf16 %v331_v36, %v329_v35  ;;  %v354_v48 = vpack.c.bf16 %v332_v42, %v330_v41  ;;  %v301_v53 = vunpack.c.2.s8 %v1309_v16  ;;  %v303_v54 = vunpack.c.3.s8 %v1309_v16  ;;  %v650_v60 = vld [vmem:[%s1275_s29 + $0x40] sm:$0xff]  ;;  %v655_v1 = vld [vmem:[%s1275_s29 + $0x68] sm:$0xff]  ;;  %v656_v24 = vld [vmem:[%s1275_s29 + $0x70] sm:$0xff]  ;;  %p1107_p1 = pneg %p1106_p0 }
  0x20   : > { %681 = vperm.xlu0 %1084, %v643_v11   ;;  %v286_v56 = vunpack.c.2.s8 %v1317_v20  ;;  %v288_v57 = vunpack.c.3.s8 %v1317_v20  ;;  %v302_v58 = vunpack.c.2.s8 %v1320_v21  ;;  %v304_v59 = vunpack.c.3.s8 %v1320_v21  ;;  %v275_v11 = vld [vmem:[%s1297_s22 + $0x10] sm:$0xff] }
  0x21   : > { %691 = vperm.xlu1 %1085, %v645_v17   ;;  %v317_v61 = vcvt.s32.f32 %v285_v51  ;;  %v319_v62 = vcvt.s32.f32 %v287_v52  ;;  %v333_v63 = vcvt.s32.f32 %v301_v53  ;;  %v335_v0 = vcvt.s32.f32 %v303_v54  ;;  %p1112_p6 = pnand %p1111_p5, %p1107_p1 }
  0x22   : > { %512 = vmatpush.bf16.msra.mxu0 %v997_v9  ;;  %1013 = vmatpush.bf16.msra.mxu2 %v997_v9  ;;  %v318_v2 = vcvt.s32.f32 %v286_v56  ;;  %v320_v3 = vcvt.s32.f32 %v288_v57  ;;  %v334_v4 = vcvt.s32.f32 %v302_v58  ;;  %v336_v5 = vcvt.s32.f32 %v304_v59 }
  0x23   : > { %561 = vmatpush.bf16.msra.mxu1 %v1005_v10  ;;  %1021 = vmatpush.bf16.msra.mxu3 %v1005_v10  ;;  %v347_v6 = vpack.c.bf16 %v319_v62, %v317_v61  ;;  %v355_v7 = vpack.c.bf16 %v335_v0, %v333_v63  ;;  %v289_v16 = vunpack.c.0.s8 %v275_v11  ;;  %v291_v17 = vunpack.c.1.s8 %v275_v11 }
  0x24   : > { %701 = vperm.xlu2 %1086, %v647_v49   ;;  %v348_v9 = vpack.c.bf16 %v320_v3, %v318_v2  ;;  %v356_v10 = vpack.c.bf16 %v336_v5, %v334_v4  ;;  %v306_v22 = vunpack.c.0.s8 %v280_v15  ;;  %v308_v23 = vunpack.c.1.s8 %v280_v15 }
  0x25   : > { %v321_v25 = vcvt.s32.f32 %v289_v16 }
  0x26   : > { %513 = vmatpush.bf16.msra.mxu0 %v996_v12  ;;  %1014 = vmatpush.bf16.msra.mxu2 %v996_v12  ;;  %v279_v12 = vld [vmem:[%s1297_s22 + $0x30] sm:$0xff]  ;;  %v338_v31 = vcvt.s32.f32 %v306_v22 }
  0x27   : > { %562 = vmatpush.bf16.msra.mxu1 %v1004_v13  ;;  %1022 = vmatpush.bf16.msra.mxu3 %v1004_v13  ;;  %v653_v13 = vld [vmem:[%s1275_s29 + $0x58] sm:$0xff]  ;;  %v305_v18 = vunpack.c.0.s8 %v279_v12  ;;  %v309_v39 = vunpack.c.2.s8 %v279_v12  ;;  %v311_v40 = vunpack.c.3.s8 %v279_v12  ;;  %s230_s29 = sand.u32 1, %s1150_s16  }
  0x28   : > { %706 = vperm.xlu0 %1084, %v648_v26   ;;  %v323_v26 = vcvt.s32.f32 %v291_v17  ;;  %s807_s10 = scalar_lea.sflag [#allocation4], %s230_s29 }
  0x29   : > { %711 = vperm.xlu1 %1085, %v649_v37   ;;  %v293_v37 = vunpack.c.2.s8 %v275_v11 }
  0x2a   : > { %514 = vmatpush.bf16.msra.mxu0 %v995_v14  ;;  %1015 = vmatpush.bf16.msra.mxu2 %v995_v14  ;;  %v276_v14 = vld [vmem:[%s1297_s22 + $0x18] sm:$0xff]  ;;  %v349_v33 = vpack.c.bf16 %v323_v26, %v321_v25  ;;  %s917_s22 = sshll.u32 %s230_s29, 7 }
  0x2b   : > { %563 = vmatpush.bf16.msra.mxu1 %v1003_v19  ;;  %1023 = vmatpush.bf16.msra.mxu3 %v1003_v19  ;;  %v307_v19 = vunpack.c.1.s8 %v279_v12  ;;  %v290_v20 = vunpack.c.0.s8 %v276_v14  ;;  %v292_v21 = vunpack.c.1.s8 %v276_v14  ;;  %v294_v41 = vunpack.c.2.s8 %v276_v14  ;;  %s1380_s26 = scalar_lea.vmem [#allocation3], %s917_s22 }
  0x2c   : > { %716 = vperm.xlu2 %1086, %v650_v60   ;;  %v296_v42 = vunpack.c.3.s8 %v276_v14  ;;  %s819_s9 = sshll.u32 %s1380_s26, 4  ;;  %s820_s9 = int_to_ptr.vmem [resolvable:$true] %s819_s9 }
  0x2d   : > { %v339_v28 = vcvt.s32.f32 %v307_v19  ;;  %v322_v29 = vcvt.s32.f32 %v290_v20  ;;  %v324_v30 = vcvt.s32.f32 %v292_v21  ;;  %v326_v49 = vcvt.s32.f32 %v294_v41 }
  0x2e   : > { %515 = vmatpush.bf16.msra.mxu0 %v994_v27  ;;  %1016 = vmatpush.bf16.msra.mxu2 %v994_v27  ;;  %v337_v27 = vcvt.s32.f32 %v305_v18 }
  0x2f   : > { %564 = vmatpush.bf16.msra.mxu1 %v1002_v32  ;;  %1024 = vmatpush.bf16.msra.mxu3 %v1002_v32  ;;  %v340_v32 = vcvt.s32.f32 %v308_v23  ;;  %v350_v35 = vpack.c.bf16 %v324_v30, %v322_v29 }
  0x30   : > { %721 = vperm.xlu0 %1084, %v651_v46   ;;  %v357_v34 = vpack.c.bf16 %v339_v28, %v337_v27 }
  0x31   : > { %726 = vperm.xlu1 %1085, %v652_v50   ;;  %v358_v36 = vpack.c.bf16 %v340_v32, %v338_v31  ;;  %v328_v50 = vcvt.s32.f32 %v296_v42 }
  0x32   : > { %516 = vmatpush.bf16.msra.mxu0 %v993_v38  ;;  %1017 = vmatpush.bf16.msra.mxu2 %v993_v38  ;;  %v295_v38 = vunpack.c.3.s8 %v275_v11 }
  0x33   : > { %565 = vmatpush.bf16.msra.mxu1 %v1001_v43  ;;  %1025 = vmatpush.bf16.msra.mxu3 %v1001_v43  ;;  %v310_v43 = vunpack.c.2.s8 %v280_v15 }
  0x34   : > { %731 = vperm.xlu2 %1086, %v653_v13   ;;  %v327_v46 = vcvt.s32.f32 %v295_v38 }
  0x35   : > { %517 = vmatmul.bf16.vlgmr.msra.gmra.mxu0 %v345_v44  ;;  %537 = vmatmul.bf16.vlgmr.msra.gmra.mxu2 %v353_v45  ;;  %v312_v44 = vunpack.c.3.s8 %v280_v15  ;;  %v325_v45 = vcvt.s32.f32 %v293_v37  ;;  %v342_v51 = vcvt.s32.f32 %v310_v43 }
  0x36   : > { %566 = vmatmul.bf16.vlgmr.msra.gmra.mxu1 %v346_v47  ;;  %586 = vmatmul.bf16.vlgmr.msra.gmra.mxu3 %v354_v48  ;;  %v341_v47 = vcvt.s32.f32 %v309_v39  ;;  %v343_v48 = vcvt.s32.f32 %v311_v40 }
  0x37   : > { %v344_v52 = vcvt.s32.f32 %v312_v44  ;;  %v351_v53 = vpack.c.bf16 %v327_v46, %v325_v45 }
  0x38   : > { %736 = vperm.xlu0 %1084, %v654_v55   ;;  %v359_v54 = vpack.c.bf16 %v343_v48, %v341_v47  ;;  %v352_v55 = vpack.c.bf16 %v328_v50, %v326_v49 }
  0x39   : > { %741 = vperm.xlu1 %1085, %v655_v1   ;;  %v360_v56 = vpack.c.bf16 %v344_v52, %v342_v51  ;;  %v1375_v1 = vld [vmem:[%s1461_s3] ss:$0 sm:$0xff] }
  0x3c   : > { %746 = vperm.xlu2 %1086, %v656_v24  }
  0x40   : > { %751 = vperm.xlu0 %1084, %v657_v8  }
  0x45   : > { %522 = vmatmul.bf16.gmra.mxu0 %v347_v6  ;;  %542 = vmatmul.bf16.gmra.mxu2 %v355_v7 }
  0x46   : > { %571 = vmatmul.bf16.gmra.mxu1 %v348_v9  ;;  %591 = vmatmul.bf16.gmra.mxu3 %v356_v10 }
  0x55   : > { %527 = vmatmul.bf16.gmra.mxu0 %v349_v33  ;;  %547 = vmatmul.bf16.gmra.mxu2 %v357_v34 }
  0x56   : > { %576 = vmatmul.bf16.gmra.mxu1 %v350_v35  ;;  %596 = vmatmul.bf16.gmra.mxu3 %v358_v36 }
  0x65   : > { %532 = vmatmul.bf16.gmra.mxu0 %v351_v53  ;;  %552 = vmatmul.bf16.gmra.mxu2 %v359_v54 }
  0x66   : > { %581 = vmatmul.bf16.gmra.mxu1 %v352_v55  ;;  %601 = vmatmul.bf16.gmra.mxu3 %v360_v56 }
  0x76   : > { %v1365_v57 = vpop.permute.xlu2 %696 }
  0x7e   : > { %v1367_v60 = vpop.permute.xlu2 %701 }
  0x86   : > { %v717_v6 = vpop.permute.xlu2 %716 }
  0x8a   : > { %v677_v58 = vpop.permute.xlu0 %676 }
  0x8b   : > { %v687_v59 = vpop.permute.xlu1 %686 }
  0x8e   : > { %v732_v44 = vpop.permute.xlu2 %731 }
  0x92   : > { %v682_v61 = vpop.permute.xlu0 %681 }
  0x93   : > { %v692_v2 = vpop.permute.xlu1 %691 }
  0x9a   : > { %v1378_v7 = vpop.permute.xlu0 %706 }
  0x9b   : > { %v1384_v16 = vpop.permute.xlu1 %711 }
  0xa2   : > { %v722_v22 = vpop.permute.xlu0 %721 }
  0xa3   : > { %v727_v31 = vpop.permute.xlu1 %726 }
  0xaa   : > { %v737_v55 = vpop.permute.xlu0 %736 }
  0xb2   : > { %v518_v62 = vpop.f32.mrf.mxu0 }
  0xb3   : > { %v567_v63 = vpop.f32.mrf.mxu1 }
  0xb4   : > { %v568_v0 = vadd.f32 %v567_v63, %v518_v62 }
  0xb6   : > { %v754_v3 = vmul.f32 %v677_v58, %v568_v0 }
  0xb8   : > { %v774_v4 = vadd.f32 %v1375_v1, %v754_v3  ;;  %v538_v5 = vpop.f32.mrf.mxu2 }
  0xb9   : > { %v587_v8 = vpop.f32.mrf.mxu3 }
  0xba   : > { %790 = vst [vmem:[%s1380_s26] sm:$0xff] %v774_v4  ;;  %v588_v9 = vadd.f32 %v587_v8, %v538_v5  ;;  %v520_v10 = vpop.f32.mrf.mxu0  ;;  %v742_v4 = vpop.permute.xlu1 %741 }
  0xbb   : > { %v569_v11 = vpop.f32.mrf.mxu1 }
  0xbc   : > { %v762_v12 = vmul.f32 %v717_v6, %v588_v9  ;;  %v570_v13 = vadd.f32 %v569_v11, %v520_v10 }
  0xbe   : > { %v782_v14 = vadd.f32 %v1375_v1, %v762_v12  ;;  %v755_v15 = vmul.f32 %v682_v61, %v570_v13 }
  0xc0   : > { %798 = vst [vmem:[%s1380_s26 + $0x40] sm:$0xff] %v782_v14  ;;  %v775_v17 = vadd.f32 %v1375_v1, %v755_v15  ;;  %v540_v18 = vpop.f32.mrf.mxu2  ;;  %v747_v15 = vpop.permute.xlu2 %746 }
  0xc1   : > { %v589_v19 = vpop.f32.mrf.mxu3 }
  0xc2   : > { %791 = vst [vmem:[%s1380_s26 + $0x8] sm:$0xff] %v775_v17  ;;  %v590_v20 = vadd.f32 %v589_v19, %v540_v18  ;;  %v523_v21 = vpop.f32.mrf.mxu0 }
  0xc3   : > { %v572_v23 = vpop.f32.mrf.mxu1 }
  0xc4   : > { %v763_v24 = vmul.f32 %v722_v22, %v590_v20  ;;  %v573_v25 = vadd.f32 %v572_v23, %v523_v21 }
  0xc6   : > { %v783_v26 = vadd.f32 %v1375_v1, %v763_v24  ;;  %v756_v27 = vmul.f32 %v687_v59, %v573_v25  ;;  %v752_v25 = vpop.permute.xlu0 %751 }
  0xc8   : > { %799 = vst [vmem:[%s1380_s26 + $0x48] sm:$0xff] %v783_v26  ;;  %v776_v28 = vadd.f32 %v1375_v1, %v756_v27  ;;  %v543_v29 = vpop.f32.mrf.mxu2 }
  0xc9   : > { %v592_v30 = vpop.f32.mrf.mxu3 }
  0xca   : > { %792 = vst [vmem:[%s1380_s26 + $0x10] sm:$0xff] %v776_v28  ;;  %v593_v32 = vadd.f32 %v592_v30, %v543_v29  ;;  %v525_v33 = vpop.f32.mrf.mxu0 }
  0xcb   : > { %v574_v34 = vpop.f32.mrf.mxu1 }
  0xcc   : > { %v764_v35 = vmul.f32 %v727_v31, %v593_v32  ;;  %v575_v36 = vadd.f32 %v574_v34, %v525_v33 }
  0xce   : > { %v784_v37 = vadd.f32 %v1375_v1, %v764_v35  ;;  %v757_v38 = vmul.f32 %v692_v2, %v575_v36 }
  0xd0   : > { %800 = vst [vmem:[%s1380_s26 + $0x50] sm:$0xff] %v784_v37  ;;  %v777_v39 = vadd.f32 %v1375_v1, %v757_v38  ;;  %v545_v40 = vpop.f32.mrf.mxu2 }
  0xd1   : > { %v594_v41 = vpop.f32.mrf.mxu3 }
  0xd2   : > { %793 = vst [vmem:[%s1380_s26 + $0x18] sm:$0xff] %v777_v39  ;;  %v595_v42 = vadd.f32 %v594_v41, %v545_v40  ;;  %v528_v43 = vpop.f32.mrf.mxu0 }
  0xd3   : > { %v577_v45 = vpop.f32.mrf.mxu1 }
  0xd4   : > { %v765_v46 = vmul.f32 %v732_v44, %v595_v42  ;;  %v578_v47 = vadd.f32 %v577_v45, %v528_v43 }
  0xd6   : > { %v785_v48 = vadd.f32 %v1375_v1, %v765_v46  ;;  %v758_v49 = vmul.f32 %v1365_v57, %v578_v47 }
  0xd8   : > { %801 = vst [vmem:[%s1380_s26 + $0x58] sm:$0xff] %v785_v48  ;;  %v778_v50 = vadd.f32 %v1375_v1, %v758_v49  ;;  %v548_v51 = vpop.f32.mrf.mxu2 }
  0xd9   : > { %v597_v52 = vpop.f32.mrf.mxu3 }
  0xda   : > { %794 = vst [vmem:[%s1380_s26 + $0x20] sm:$0xff] %v778_v50  ;;  %v598_v53 = vadd.f32 %v597_v52, %v548_v51  ;;  %v530_v54 = vpop.f32.mrf.mxu0 }
  0xdb   : > { %v579_v56 = vpop.f32.mrf.mxu1 }
  0xdc   : > { %v766_v58 = vmul.f32 %v737_v55, %v598_v53  ;;  %v580_v59 = vadd.f32 %v579_v56, %v530_v54 }
  0xde   : > { %v786_v61 = vadd.f32 %v1375_v1, %v766_v58  ;;  %v759_v62 = vmul.f32 %v1367_v60, %v580_v59 }
  0xe0   : > { %802 = vst [vmem:[%s1380_s26 + $0x60] sm:$0xff] %v786_v61  ;;  %v779_v57 = vadd.f32 %v1375_v1, %v759_v62  ;;  %v550_v63 = vpop.f32.mrf.mxu2 }
  0xe1   : > { %v599_v0 = vpop.f32.mrf.mxu3 }
  0xe2   : > { %795 = vst [vmem:[%s1380_s26 + $0x28] sm:$0xff] %v779_v57  ;;  %v600_v2 = vadd.f32 %v599_v0, %v550_v63  ;;  %v533_v3 = vpop.f32.mrf.mxu0 }
  0xe3   : > { %v582_v5 = vpop.f32.mrf.mxu1 }
  0xe4   : > { %v767_v6 = vmul.f32 %v742_v4, %v600_v2  ;;  %v583_v8 = vadd.f32 %v582_v5, %v533_v3 }
  0xe6   : > { %v787_v9 = vadd.f32 %v1375_v1, %v767_v6  ;;  %v760_v10 = vmul.f32 %v1378_v7, %v583_v8 }
  0xe8   : > { %803 = vst [vmem:[%s1380_s26 + $0x68] sm:$0xff] %v787_v9  ;;  %v780_v60 = vadd.f32 %v1375_v1, %v760_v10  ;;  %v553_v11 = vpop.f32.mrf.mxu2 }
  0xe9   : > { %v602_v12 = vpop.f32.mrf.mxu3 }
  0xea   : > { %796 = vst [vmem:[%s1380_s26 + $0x30] sm:$0xff] %v780_v60  ;;  %v603_v13 = vadd.f32 %v602_v12, %v553_v11  ;;  %v535_v14 = vpop.f32.mrf.mxu0 }
  0xeb   : > { %v584_v17 = vpop.f32.mrf.mxu1 }
  0xec   : > { %v768_v18 = vmul.f32 %v747_v15, %v603_v13  ;;  %v585_v19 = vadd.f32 %v584_v17, %v535_v14 }
  0xee   : > { %v788_v20 = vadd.f32 %v1375_v1, %v768_v18  ;;  %v761_v7 = vmul.f32 %v1384_v16, %v585_v19 }
  0xf0   : > { %804 = vst [vmem:[%s1380_s26 + $0x70] sm:$0xff] %v788_v20  ;;  %v781_v21 = vadd.f32 %v1375_v1, %v761_v7  ;;  %v555_v22 = vpop.f32.mrf.mxu2 }
  0xf1   : > { %v604_v23 = vpop.f32.mrf.mxu3 }
  0xf2   : > { %797 = vst [vmem:[%s1380_s26 + $0x38] sm:$0xff] %v781_v21  ;;  %v605_v24 = vadd.f32 %v604_v23, %v555_v22 }
  0xf4   : > { %v769_v26 = vmul.f32 %v752_v25, %v605_v24 }
  0xf6   : > { %v789_v16 = vadd.f32 %v1375_v1, %v769_v26 }
  0xf8   : > { %805 = vst [vmem:[%s1380_s26 + $0x78] sm:$0xff] %v789_v16 }
  0xf9   : > { %1115 = shalt.err (!%p1112_p6)
}
  0xfa   : > { %s1169_s29 = smov 128   ;;  %s1170_s24 = smov 8  }
  0xfb   : > { %1026 = dma.vmem_to_hbm [thread:$0]  (%p1236_p4), %s820_s9, 2048, %s822_s18, %s807_s10, %s1169_s29, %s1169_s29, %s1170_s24  }
  0xfc PF: > { %p1032_p7 = scmp.ge.s32.totalorder %s1166_s20, 2  ;;  %s836_s26 = sand.u32 1, %s1146_s15  }
  0xfd   : > { %s837_s30 = scalar_lea.sflag [#allocation4], %s836_s26 }
  0xfe   : > { %p1029_p9 = pnand %p1032_p7, %p1243_p8 }
 0x100   : > { %p1030_p10 = pneg %p1029_p9 }
 0x102   : > { %1141 = dma.done.wait (%p1030_p10), %s837_s30, 2048  }
 0x103   : > { %1143 = vsyncadd (%p1030_p10), %s837_s30, 4294965248  ;;  %s17_s20 = sadd.s32 1, %s1166_s20   ;;  %s1466_s15 = smov %s1150_s16 }
 0x104   : > { %p14_p11 = scmp.ge.s32.totalorder %s17_s20, 4   ;;  %s1467_s16 = smov %s1154_s17 }
 0x105   : > { %s1468_s17 = smov %s1249_s28  ;;  %s1469_s18 = smov %s1162_s19 }
 0x106   : > { %s1470_s19 = smov %s1472_s23  ;;  %16 = sbr.rel (!%p14_p11) target bundleno = 4 (0x4), region = 83 }
 0x10b   :  { %843 = vsyncpa [#allocation4], 1 }
 0x10c   :  { %845 = vsyncpa [#allocation4 + $0x1], 1 }

// kernel: _gcn_forward_padded.3
= control target key start
LH: loop header
LB: loop body
LE: loop exit
PB: predicated region body
PF: predicated region fallthrough
CT: control target
= control target key end

     0   :  { %8 = vsyncpa [#allocation3], 0  ;;  %s871_s12 = smov 0   ;;  %s930_s0 = inlined_call_operand.vmem [shape: bf16[256,128], index: 0, kind: input, shape index: {}]   ;;  %s931_s1 = inlined_call_operand.hbm [shape: bf16[128,128], index: 1, kind: input, shape index: {}]   ;;  %s932_s2 = inlined_call_operand.vmem [shape: f32[256,1], index: 2, kind: input, shape index: {}]   ;;  %s933_s3 = inlined_call_operand.vmem [shape: bf16[256,128], index: 3, kind: output, shape index: {}]  }
   0x1 LB: > { %s129_s15 = sshll.u32 %s931_s1, 4  ;;  %s614_s16 = sadd.s32 4294967295, %s845_s12   ;;  %s845_s12 = sphi %s871_s12, %s14_s12   ;;  %s130_s15 = int_to_ptr.hbm [resolvable:$true] %s129_s15 }
   0x2   : > { %p616_p0 = scmp.ge.s32.totalorder %s845_s12, 1  ;;  %p118_p1 = scmp.lt.s32.totalorder %s845_s12, 3 }
   0x3   : > { %p788_p2 = scmp.eq.s32.totalorder %s614_s16, 0  ;;  %s847_s17 = smov [#allocation2]  }
   0x4   : > { %p119_p3 = pnand %p616_p0, %p118_p1  ;;  %s131_s18 = sshll.u32 %s847_s17, 4  ;;  %s132_s18 = int_to_ptr.vmem [resolvable:$true] %s131_s18 }
   0x5   : > { %s848_s19 = smov 64   ;;  %s849_s20 = smov 4  }
   0x6   : > { %p784_p4 = pneg %p119_p3  ;;  %165 = sbr.rel (%p119_p3) target bundleno = 209 (0xd1), region = 32 }
   0x8   : > { %p785_p5 = pnand %p788_p2, %p784_p4 }
   0xa   : > { %787 = dma.hbm_to_vmem [thread:$0]  (!%p785_p5), %s130_s15, 1024, %s132_s18, [#allocation3], %s848_s19, %s848_s19, %s849_s20  }
   0xb   : > { %840 = dma.done.wait (%p788_p2), [#allocation3], 1024  }
   0xc   : > { %842 = vsyncadd (%p788_p2), [#allocation3], 4294966272  ;;  %s621_s21 = sshll.u32 %s614_s16, 4  ;;  %v850_v0 = vmov 0   ;;  %v708_v2 = vld [vmem:[#allocation2 + $0x38] sm:$0xff]  ;;  %v707_v4 = vld [vmem:[#allocation2 + $0x30] sm:$0xff] }
   0xd   : > { %802 = vset.pattern.permute.xlu0 %v850_v0  ;;  %p196_p6 = scmp.lt.s32.totalorder %s621_s21, 31  ;;  %803 = vset.pattern.permute.xlu1 %v850_v0  ;;  %v706_v6 = vld [vmem:[#allocation2 + $0x28] sm:$0xff]  ;;  %v705_v9 = vld [vmem:[#allocation2 + $0x20] sm:$0xff]  ;;  %v704_v12 = vld [vmem:[#allocation2 + $0x18] sm:$0xff] }
   0xe   : > { %804 = vset.pattern.permute.xlu2 %v850_v0  ;;  %341 = vmatpush.bf16.msra.mxu0 %v708_v2  ;;  %v703_v14 = vld [vmem:[#allocation2 + $0x10] sm:$0xff]  ;;  %v702_v17 = vld [vmem:[#allocation2 + $0x8] sm:$0xff]  ;;  %v701_v19 = vld [vmem:[#allocation2] sm:$0xff] }
   0xf   : > { %s935_s21 = smov (!%p196_p6, %s621_s21), 31  ;;  %756 = vmatpush.bf16.msra.mxu1 %v708_v2  ;;  %757 = vmatpush.bf16.msra.mxu2 %v708_v2 }
  0x10   : > { %s624_s22 = sshll.u32 %s935_s21, 3  ;;  %758 = vmatpush.bf16.msra.mxu3 %v708_v2  ;;  %s622_s26 = sshll.u32 %s935_s21, 2 }
  0x11   : > { %s888_s25 = scalar_lea.vmem %s932_s2, %s624_s22  ;;  %s199_s29 = scalar_lea.vmem %s930_s0, %s622_s26 }
  0x12   : > { %v390_v1 = vld [vmem:[%s888_s25] sm:$0xff]  ;;  %v392_v3 = vld [vmem:[%s888_s25 + $0x10] sm:$0xff]  ;;  %342 = vmatpush.bf16.msra.mxu0 %v707_v4  ;;  %v391_v5 = vld [vmem:[%s888_s25 + $0x8] sm:$0xff]  ;;  %s917_s5 = scalar_lea.vmem %s933_s3, %s622_s26 }
  0x13   : > { %408 = vperm.xlu0 %802, %v390_v1   ;;  %418 = vperm.xlu1 %803, %v392_v3   ;;  %v394_v7 = vld [vmem:[%s888_s25 + $0x20] sm:$0xff]  ;;  %v393_v8 = vld [vmem:[%s888_s25 + $0x18] sm:$0xff]  ;;  %v395_v10 = vld [vmem:[%s888_s25 + $0x28] sm:$0xff] }
  0x14   : > { %759 = vmatpush.bf16.msra.mxu1 %v707_v4  ;;  %760 = vmatpush.bf16.msra.mxu2 %v707_v4  ;;  %v396_v11 = vld [vmem:[%s888_s25 + $0x30] sm:$0xff]  ;;  %v397_v13 = vld [vmem:[%s888_s25 + $0x38] sm:$0xff]  ;;  %v398_v15 = vld [vmem:[%s888_s25 + $0x40] sm:$0xff] }
  0x15   : > { %761 = vmatpush.bf16.msra.mxu3 %v707_v4  ;;  %428 = vperm.xlu2 %804, %v394_v7   ;;  %v399_v16 = vld [vmem:[%s888_s25 + $0x48] sm:$0xff]  ;;  %v400_v18 = vld [vmem:[%s888_s25 + $0x50] sm:$0xff]  ;;  %v693_v20 = vld [vmem:[%s199_s29] sm:$0xff] }
  0x16   : > { %343 = vmatpush.bf16.msra.mxu0 %v706_v6  ;;  %v401_v21 = vld [vmem:[%s888_s25 + $0x58] sm:$0xff]  ;;  %v402_v22 = vld [vmem:[%s888_s25 + $0x60] sm:$0xff]  ;;  %v695_v23 = vld [vmem:[%s199_s29 + $0x10] sm:$0xff] }
  0x17   : > { %v697_v24 = vld [vmem:[%s199_s29 + $0x20] sm:$0xff]  ;;  %v699_v25 = vld [vmem:[%s199_s29 + $0x30] sm:$0xff]  ;;  %v403_v26 = vld [vmem:[%s888_s25 + $0x68] sm:$0xff] }
  0x18   : > { %762 = vmatpush.bf16.msra.mxu1 %v706_v6  ;;  %763 = vmatpush.bf16.msra.mxu2 %v706_v6  ;;  %v404_v27 = vld [vmem:[%s888_s25 + $0x70] sm:$0xff]  ;;  %v405_v28 = vld [vmem:[%s888_s25 + $0x78] sm:$0xff]  ;;  %v694_v29 = vld [vmem:[%s199_s29 + $0x8] sm:$0xff] }
  0x19   : > { %764 = vmatpush.bf16.msra.mxu3 %v706_v6  ;;  %v696_v30 = vld [vmem:[%s199_s29 + $0x18] sm:$0xff]  ;;  %v698_v31 = vld [vmem:[%s199_s29 + $0x28] sm:$0xff] }
  0x1a   : > { %344 = vmatpush.bf16.msra.mxu0 %v705_v9  ;;  %v700_v32 = vld [vmem:[%s199_s29 + $0x38] sm:$0xff] }
  0x1b   : > { %413 = vperm.xlu0 %802, %v391_v5   ;;  %423 = vperm.xlu1 %803, %v393_v8  }
  0x1c   : > { %765 = vmatpush.bf16.msra.mxu1 %v705_v9  ;;  %766 = vmatpush.bf16.msra.mxu2 %v705_v9 }
  0x1d   : > { %767 = vmatpush.bf16.msra.mxu3 %v705_v9  ;;  %433 = vperm.xlu2 %804, %v395_v10  }
  0x1e   : > { %345 = vmatpush.bf16.msra.mxu0 %v704_v12 }
  0x20   : > { %768 = vmatpush.bf16.msra.mxu1 %v704_v12  ;;  %769 = vmatpush.bf16.msra.mxu2 %v704_v12 }
  0x21   : > { %770 = vmatpush.bf16.msra.mxu3 %v704_v12 }
  0x22   : > { %346 = vmatpush.bf16.msra.mxu0 %v703_v14 }
  0x23   : > { %438 = vperm.xlu0 %802, %v396_v11   ;;  %443 = vperm.xlu1 %803, %v397_v13  }
  0x24   : > { %771 = vmatpush.bf16.msra.mxu1 %v703_v14  ;;  %772 = vmatpush.bf16.msra.mxu2 %v703_v14 }
  0x25   : > { %773 = vmatpush.bf16.msra.mxu3 %v703_v14  ;;  %448 = vperm.xlu2 %804, %v398_v15  }
  0x26   : > { %347 = vmatpush.bf16.msra.mxu0 %v702_v17 }
  0x28   : > { %774 = vmatpush.bf16.msra.mxu1 %v702_v17  ;;  %775 = vmatpush.bf16.msra.mxu2 %v702_v17 }
  0x29   : > { %776 = vmatpush.bf16.msra.mxu3 %v702_v17 }
  0x2a   : > { %348 = vmatpush.bf16.msra.mxu0 %v701_v19 }
  0x2b   : > { %453 = vperm.xlu0 %802, %v399_v16   ;;  %458 = vperm.xlu1 %803, %v400_v18  }
  0x2c   : > { %777 = vmatpush.bf16.msra.mxu1 %v701_v19  ;;  %778 = vmatpush.bf16.msra.mxu2 %v701_v19 }
  0x2d   : > { %779 = vmatpush.bf16.msra.mxu3 %v701_v19  ;;  %463 = vperm.xlu2 %804, %v401_v21  }
  0x2e   : > { %349 = vmatmul.bf16.vlgmr.msra.gmra.mxu0 %v693_v20 }
  0x2f   : > { %359 = vmatmul.bf16.vlgmr.msra.gmra.mxu1 %v695_v23  ;;  %369 = vmatmul.bf16.vlgmr.msra.gmra.mxu2 %v697_v24 }
  0x30   : > { %379 = vmatmul.bf16.vlgmr.msra.gmra.mxu3 %v699_v25 }
  0x33   : > { %468 = vperm.xlu0 %802, %v402_v22   ;;  %473 = vperm.xlu1 %803, %v403_v26  }
  0x35   : > { %478 = vperm.xlu2 %804, %v404_v27  }
  0x3b   : > { %483 = vperm.xlu0 %802, %v405_v28  }
  0x3e   : > { %354 = vmatmul.bf16.gmra.mxu0 %v694_v29 }
  0x3f   : > { %364 = vmatmul.bf16.gmra.mxu1 %v696_v30  ;;  %374 = vmatmul.bf16.gmra.mxu2 %v698_v31 }
  0x40   : > { %384 = vmatmul.bf16.gmra.mxu3 %v700_v32 }
  0x6f   : > { %v429_v37 = vpop.permute.xlu2 %428 }
  0x77   : > { %v434_v41 = vpop.permute.xlu2 %433 }
  0x7f   : > { %v449_v53 = vpop.permute.xlu2 %448 }
  0x85   : > { %v409_v33 = vpop.permute.xlu0 %408  ;;  %v419_v34 = vpop.permute.xlu1 %418 }
  0x87   : > { %v464_v4 = vpop.permute.xlu2 %463 }
  0x8d   : > { %v414_v35 = vpop.permute.xlu0 %413  ;;  %v424_v36 = vpop.permute.xlu1 %423 }
  0x8f   : > { %v479_v15 = vpop.permute.xlu2 %478 }
  0x95   : > { %v439_v38 = vpop.permute.xlu0 %438  ;;  %v444_v39 = vpop.permute.xlu1 %443 }
  0x9d   : > { %v454_v43 = vpop.permute.xlu0 %453  ;;  %v459_v44 = vpop.permute.xlu1 %458 }
  0xa5   : > { %v469_v56 = vpop.permute.xlu0 %468  ;;  %v474_v57 = vpop.permute.xlu1 %473 }
  0xab   : > { %v350_v40 = vpop.f32.mrf.mxu0 }
  0xac   : > { %v360_v42 = vpop.f32.mrf.mxu1  ;;  %v486_v48 = vmul.f32 %v409_v33, %v350_v40 }
  0xad   : > { %v490_v51 = vmul.f32 %v429_v37, %v360_v42  ;;  %v484_v17 = vpop.permute.xlu0 %483 }
  0xb2   : > { %v370_v45 = vpop.f32.mrf.mxu2 }
  0xb3   : > { %v380_v46 = vpop.f32.mrf.mxu3  ;;  %v352_v47 = vpop.f32.mrf.mxu0  ;;  %v494_v59 = vmul.f32 %v449_v53, %v370_v45 }
  0xb4   : > { %v487_v49 = vmul.f32 %v414_v35, %v352_v47  ;;  %v362_v50 = vpop.f32.mrf.mxu1  ;;  %v498_v63 = vmul.f32 %v469_v56, %v380_v46 }
  0xb5   : > { %v491_v52 = vmul.f32 %v434_v41, %v362_v50 }
  0xb6   : > { %v712_v54 = vpack.c.bf16 %v487_v49, %v486_v48 }
  0xb7   : > { %v722_v55 = vpack.c.bf16 %v491_v52, %v490_v51 }
  0xb8   : > { %713 = vst [vmem:[%s917_s5] sm:$0xff] %v712_v54  }
  0xb9   : > { %750 = vst [vmem:[%s917_s5 + $0x10] sm:$0xff] %v722_v55  }
  0xba   : > { %v372_v58 = vpop.f32.mrf.mxu2 }
  0xbb   : > { %v495_v60 = vmul.f32 %v454_v43, %v372_v58  ;;  %v382_v61 = vpop.f32.mrf.mxu3  ;;  %v355_v62 = vpop.f32.mrf.mxu0 }
  0xbc   : > { %v499_v0 = vmul.f32 %v474_v57, %v382_v61  ;;  %v365_v1 = vpop.f32.mrf.mxu1  ;;  %v488_v8 = vmul.f32 %v419_v34, %v355_v62 }
  0xbd   : > { %v732_v2 = vpack.c.bf16 %v495_v60, %v494_v59  ;;  %v492_v11 = vmul.f32 %v439_v38, %v365_v1 }
  0xbe   : > { %v742_v3 = vpack.c.bf16 %v499_v0, %v498_v63 }
  0xbf   : > { %752 = vst [vmem:[%s917_s5 + $0x20] sm:$0xff] %v732_v2  }
  0xc0   : > { %754 = vst [vmem:[%s917_s5 + $0x30] sm:$0xff] %v742_v3  }
  0xc2   : > { %v375_v5 = vpop.f32.mrf.mxu2 }
  0xc3   : > { %v385_v6 = vpop.f32.mrf.mxu3  ;;  %v357_v7 = vpop.f32.mrf.mxu0  ;;  %v496_v18 = vmul.f32 %v459_v44, %v375_v5 }
  0xc4   : > { %v489_v9 = vmul.f32 %v424_v36, %v357_v7  ;;  %v367_v10 = vpop.f32.mrf.mxu1  ;;  %v500_v21 = vmul.f32 %v479_v15, %v385_v6 }
  0xc5   : > { %v493_v12 = vmul.f32 %v444_v39, %v367_v10 }
  0xc6   : > { %v717_v13 = vpack.c.bf16 %v489_v9, %v488_v8 }
  0xc7   : > { %v727_v14 = vpack.c.bf16 %v493_v12, %v492_v11 }
  0xc8   : > { %749 = vst [vmem:[%s917_s5 + $0x8] sm:$0xff] %v717_v13  }
  0xc9   : > { %751 = vst [vmem:[%s917_s5 + $0x18] sm:$0xff] %v727_v14  }
  0xca   : > { %v377_v16 = vpop.f32.mrf.mxu2 }
  0xcb   : > { %v497_v19 = vmul.f32 %v464_v4, %v377_v16  ;;  %v387_v20 = vpop.f32.mrf.mxu3 }
  0xcc   : > { %v501_v22 = vmul.f32 %v484_v17, %v387_v20 }
  0xcd   : > { %v737_v23 = vpack.c.bf16 %v497_v19, %v496_v18 }
  0xce   : > { %v747_v24 = vpack.c.bf16 %v501_v22, %v500_v21 }
  0xcf   : > { %753 = vst [vmem:[%s917_s5 + $0x28] sm:$0xff] %v737_v23  }
  0xd0   : > { %755 = vst [vmem:[%s917_s5 + $0x38] sm:$0xff] %v747_v24  }
  0xd1 PF: > { %s14_s12 = sadd.s32 1, %s845_s12  }
  0xd2   : > { %p11_p7 = scmp.ge.s32.totalorder %s14_s12, 4  }
  0xd4   :  { %13 = sbr.rel (!%p11_p7) target bundleno = 1 (0x1), region = 70 }
  0xd9   :  { %556 = vsyncpa [#allocation3], 1 }
  0xda   :  { %558 = vsyncpa [#allocation3 + $0x1], 1 }

// kernel: _gcn_forward_padded.4
= control target key start
LH: loop header
LB: loop body
LE: loop exit
PB: predicated region body
PF: predicated region fallthrough
CT: control target
= control target key end

     0   :  { %10 = vsyncpa [#allocation4], 0  ;;  %s1460_s18 = smov 0   ;;  %s1462_s19 = smov 0   ;;  %s1707_s0 = inlined_call_operand.vmem [shape: s8[256,256], index: 0, kind: input, shape index: {}]   ;;  %s1708_s1 = inlined_call_operand.vmem [shape: bf16[256,128], index: 1, kind: input, shape index: {}]   ;;  %s1709_s2 = inlined_call_operand.vmem [shape: f32[256,1], index: 2, kind: input, shape index: {}]   ;;  %s1710_s3 = inlined_call_operand.vmem [shape: f32[1,128], index: 3, kind: input, shape index: {}]   ;;  %s1711_s4 = inlined_call_operand.hbm [shape: bf16[128,128], index: 4, kind: input, shape index: {}]   ;;  %s1712_s5 = inlined_call_operand.vmem [shape: bf16[256,128], index: 5, kind: output, shape index: {}]  }
   0x1   :  { %s1464_s20 = smov 0  }
   0x2 LB: > { %s1118_s21 = sadd.s32 4294967295, %s1424_s20   ;;  %s28_s22 = sadd.s32 1, %s1420_s19  ;;  %s1424_s20 = sphi %s1464_s20, %s16_s20   ;;  %s1420_s19 = sphi %s1462_s19, %s1714_s19   ;;  %s1416_s18 = sphi %s1460_s18, %s1713_s18  }
   0x3   : > { %p30_p0 = scmp.ge.s32.totalorder %s28_s22, 2  ;;  %p1120_p1 = scmp.ge.s32.totalorder %s1424_s20, 1 }
   0x4   : > { %p176_p2 = scmp.lt.s32.totalorder %s1424_s20, 3  ;;  %p1334_p4 = scmp.eq.s32.totalorder %s1118_s21, 0 }
   0x5   : > { %s1716_s22 = smov (%p30_p0, %s28_s22), 0  ;;  %s193_s25 = sshll.u32 %s1711_s4, 4  ;;  %s194_s25 = int_to_ptr.hbm [resolvable:$true] %s193_s25 }
   0x6   : > { %p177_p3 = pnand %p1120_p1, %p176_p2  ;;  %s1426_s26 = smov [#allocation3]  }
   0x7   : > { %s195_s27 = sshll.u32 %s1426_s26, 4  ;;  %s1427_s28 = smov 64   ;;  %s196_s27 = int_to_ptr.vmem [resolvable:$true] %s195_s27 }
   0x8   : > { %p1330_p5 = pneg %p177_p3  ;;  %s1428_s29 = smov 4  }
   0x9   : > { %235 = sbr.rel (%p177_p3) target bundleno = 419 (0x1a3), region = 40 }
   0xa   : > { %p1331_p6 = pnand %p1334_p4, %p1330_p5 }
   0xc   : > { %1333 = dma.hbm_to_vmem [thread:$0]  (!%p1331_p6), %s194_s25, 1024, %s196_s27, [#allocation4], %s1427_s28, %s1427_s28, %s1428_s29  }
   0xe   : > { %1411 = dma.done.wait (%p1334_p4), [#allocation4], 1024  }
   0xf   : > { %1413 = vsyncadd (%p1334_p4), [#allocation4], 4294966272  ;;  %s1128_s30 = sshll.u32 %s1416_s18, 4  ;;  %v1429_v0 = vmov 0   ;;  %v1238_v1 = vld [vmem:[%s1708_s1 + $0x38] sm:$0xff]  ;;  %s1125_s14 = sshll.u32 %s1416_s18, 2 }
  0x10   : > { %1364 = vset.pattern.permute.xlu0 %v1429_v0  ;;  %p287_p7 = scmp.lt.s32.totalorder %s1128_s30, 31  ;;  %1365 = vset.pattern.permute.xlu1 %v1429_v0  ;;  %v1499_v2 = vld [vmem:[%s1708_s1 + $0x78] sm:$0xff]  ;;  %v1237_v4 = vld [vmem:[%s1708_s1 + $0x30] sm:$0xff]  ;;  %p276_p8 = scmp.lt.s32.totalorder %s1125_s14, 7  ;;  %v1236_v7 = vld [vmem:[%s1708_s1 + $0x28] sm:$0xff] }
  0x11   : > { %1366 = vset.pattern.permute.xlu2 %v1429_v0  ;;  %555 = vmatpush.bf16.msra.mxu0 %v1238_v1  ;;  %v1510_v5 = vld [vmem:[%s1708_s1 + $0x70] sm:$0xff]  ;;  %v1521_v9 = vld [vmem:[%s1708_s1 + $0x68] sm:$0xff]  ;;  %v1235_v10 = vld [vmem:[%s1708_s1 + $0x20] sm:$0xff] }
  0x12   : > { %s1718_s30 = smov (!%p287_p7, %s1128_s30), 31  ;;  %1302 = vmatpush.bf16.msra.mxu3 %v1238_v1  ;;  %604 = vmatpush.bf16.msra.mxu1 %v1499_v2  ;;  %s1720_s14 = smov (!%p276_p8, %s1125_s14), 7  ;;  %v1530_v11 = vld [vmem:[%s1708_s1 + $0x60] sm:$0xff]  ;;  %v1234_v13 = vld [vmem:[%s1708_s1 + $0x18] sm:$0xff]  ;;  %v1233_v16 = vld [vmem:[%s1708_s1 + $0x10] sm:$0xff] }
  0x13   : > { %s1129_s6 = sshll.u32 %s1718_s30, 3  ;;  %v1541_v15 = vld [vmem:[%s1708_s1 + $0x58] sm:$0xff]  ;;  %v1557_v19 = vld [vmem:[%s1708_s1 + $0x50] sm:$0xff]  ;;  %v1232_v26 = vld [vmem:[%s1708_s1 + $0x8] sm:$0xff]  ;;  %s1131_s7 = sshll.u32 %s1718_s30, 2 }
  0x14   : > { %s1491_s9 = scalar_lea.vmem %s1709_s2, %s1129_s6  ;;  %s1230_s6 = sshll.u32 %s1720_s14, 4  ;;  %v1569_v30 = vld [vmem:[%s1708_s1 + $0x48] sm:$0xff]  ;;  %v1231_v35 = vld [vmem:[%s1708_s1] sm:$0xff] }
  0x15   : > { %v688_v3 = vld [vmem:[%s1491_s9] sm:$0xff]  ;;  %v690_v6 = vld [vmem:[%s1491_s9 + $0x10] sm:$0xff]  ;;  %556 = vmatpush.bf16.msra.mxu0 %v1237_v4  ;;  %v689_v8 = vld [vmem:[%s1491_s9 + $0x8] sm:$0xff]  ;;  %s1546_s14 = scalar_lea.vmem %s1707_s0, %s1230_s6  ;;  %s1675_s11 = scalar_lea.vmem %s1712_s5, %s1131_s7 }
  0x16   : > { %722 = vperm.xlu0 %1364, %v688_v3   ;;  %1303 = vmatpush.bf16.msra.mxu3 %v1237_v4  ;;  %v691_v12 = vld [vmem:[%s1491_s9 + $0x18] sm:$0xff]  ;;  %v694_v14 = vld [vmem:[%s1491_s9 + $0x30] sm:$0xff]  ;;  %v319_v17 = vld [vmem:[%s1546_s14] sm:$0xff] }
  0x17   : > { %605 = vmatpush.bf16.msra.mxu1 %v1510_v5  ;;  %732 = vperm.xlu1 %1365, %v690_v6   ;;  %v325_v18 = vld [vmem:[%s1546_s14 + $0x30] sm:$0xff]  ;;  %v320_v20 = vld [vmem:[%s1546_s14 + $0x8] sm:$0xff]  ;;  %v695_v21 = vld [vmem:[%s1491_s9 + $0x38] sm:$0xff]  ;;  %v327_v22 = vunpack.c.0.s8 %v319_v17  ;;  %v329_v23 = vunpack.c.1.s8 %v319_v17  ;;  %v331_v45 = vunpack.c.2.s8 %v319_v17  ;;  %v333_v46 = vunpack.c.3.s8 %v319_v17 }
  0x18   : > { %v351_v24 = vunpack.c.0.s8 %v325_v18  ;;  %v353_v25 = vunpack.c.1.s8 %v325_v18  ;;  %v697_v27 = vld [vmem:[%s1491_s9 + $0x48] sm:$0xff]  ;;  %v328_v28 = vunpack.c.0.s8 %v320_v20  ;;  %v330_v29 = vunpack.c.1.s8 %v320_v20  ;;  %v1578_v38 = vld [vmem:[%s1708_s1 + $0x40] sm:$0xff]  ;;  %v698_v43 = vld [vmem:[%s1491_s9 + $0x50] sm:$0xff] }
  0x19   : > { %557 = vmatpush.bf16.msra.mxu0 %v1236_v7  ;;  %v359_v31 = vcvt.s32.f32 %v327_v22  ;;  %v361_v32 = vcvt.s32.f32 %v329_v23  ;;  %v700_v41 = vld [vmem:[%s1491_s9 + $0x60] sm:$0xff]  ;;  %v355_v47 = vunpack.c.2.s8 %v325_v18  ;;  %v357_v48 = vunpack.c.3.s8 %v325_v18  ;;  %v699_v49 = vld [vmem:[%s1491_s9 + $0x58] sm:$0xff]  ;;  %v693_v53 = vld [vmem:[%s1491_s9 + $0x28] sm:$0xff] }
  0x1a   : > { %1304 = vmatpush.bf16.msra.mxu3 %v1236_v7  ;;  %v383_v33 = vcvt.s32.f32 %v351_v24  ;;  %v385_v34 = vcvt.s32.f32 %v353_v25  ;;  %v360_v36 = vcvt.s32.f32 %v328_v28  ;;  %v362_v37 = vcvt.s32.f32 %v330_v29  ;;  %v692_v44 = vld [vmem:[%s1491_s9 + $0x20] sm:$0xff]  ;;  %v703_v52 = vld [vmem:[%s1491_s9 + $0x78] sm:$0xff]  ;;  %v321_v63 = vld [vmem:[%s1546_s14 + $0x10] sm:$0xff] }
  0x1b   : > { %606 = vmatpush.bf16.msra.mxu1 %v1521_v9  ;;  %v391_v39 = vpack.c.bf16 %v361_v32, %v359_v31  ;;  %742 = vperm.xlu2 %1366, %v692_v44   ;;  %v332_v50 = vunpack.c.2.s8 %v320_v20  ;;  %v334_v51 = vunpack.c.3.s8 %v320_v20  ;;  %v363_v54 = vcvt.s32.f32 %v331_v45  ;;  %v326_v0 = vld [vmem:[%s1546_s14 + $0x38] sm:$0xff]  ;;  %v696_v1 = vld [vmem:[%s1491_s9 + $0x40] sm:$0xff] }
  0x1c   : > { %v403_v40 = vpack.c.bf16 %v385_v34, %v383_v33  ;;  %v392_v42 = vpack.c.bf16 %v362_v37, %v360_v36  ;;  %v365_v55 = vcvt.s32.f32 %v333_v46  ;;  %v387_v56 = vcvt.s32.f32 %v355_v47  ;;  %v324_v36 = vld [vmem:[%s1546_s14 + $0x28] sm:$0xff] }
  0x1d   : > { %558 = vmatpush.bf16.msra.mxu0 %v1235_v10  ;;  %v389_v57 = vcvt.s32.f32 %v357_v48  ;;  %v364_v58 = vcvt.s32.f32 %v332_v50  ;;  %v366_v59 = vcvt.s32.f32 %v334_v51  ;;  %v335_v3 = vunpack.c.0.s8 %v321_v63 }
  0x1e   : > { %727 = vperm.xlu0 %1364, %v689_v8   ;;  %1305 = vmatpush.bf16.msra.mxu3 %v1235_v10  ;;  %v393_v60 = vpack.c.bf16 %v365_v55, %v363_v54  ;;  %v337_v4 = vunpack.c.1.s8 %v321_v63  ;;  %v354_v6 = vunpack.c.1.s8 %v326_v0  ;;  %v339_v20 = vunpack.c.2.s8 %v321_v63  ;;  %v1254_v55 = vld [vmem:[#allocation3 + $0x38] sm:$0xff] }
  0x1f   : > { %607 = vmatpush.bf16.msra.mxu1 %v1530_v11  ;;  %737 = vperm.xlu1 %1365, %v691_v12   ;;  %v405_v61 = vpack.c.bf16 %v389_v57, %v387_v56  ;;  %v394_v62 = vpack.c.bf16 %v366_v59, %v364_v58  ;;  %v367_v10 = vcvt.s32.f32 %v335_v3  ;;  %v356_v22 = vunpack.c.2.s8 %v326_v0  ;;  %v1253_v57 = vld [vmem:[#allocation3 + $0x30] sm:$0xff]  ;;  %v1252_v59 = vld [vmem:[#allocation3 + $0x28] sm:$0xff] }
  0x20   : > { %v358_v23 = vunpack.c.3.s8 %v326_v0  ;;  %v350_v50 = vunpack.c.3.s8 %v324_v36  ;;  %924 = vmatpush.bf16.msra.mxu2 %v1254_v55 }
  0x21   : > { %559 = vmatpush.bf16.msra.mxu0 %v1234_v13  ;;  %v388_v28 = vcvt.s32.f32 %v356_v22 }
  0x22   : > { %1306 = vmatpush.bf16.msra.mxu3 %v1234_v13  ;;  %v386_v13 = vcvt.s32.f32 %v354_v6  ;;  %v390_v29 = vcvt.s32.f32 %v358_v23  ;;  %v382_v54 = vcvt.s32.f32 %v350_v50 }
  0x23   : > { %608 = vmatpush.bf16.msra.mxu1 %v1541_v15  ;;  %747 = vperm.xlu2 %1366, %v693_v53  }
  0x24   : > { %v406_v33 = vpack.c.bf16 %v390_v29, %v388_v28  ;;  %925 = vmatpush.bf16.msra.mxu2 %v1253_v57 }
  0x25   : > { %560 = vmatpush.bf16.msra.mxu0 %v1233_v16 }
  0x26   : > { %752 = vperm.xlu0 %1364, %v694_v14   ;;  %1307 = vmatpush.bf16.msra.mxu3 %v1233_v16 }
  0x27   : > { %609 = vmatpush.bf16.msra.mxu1 %v1557_v19  ;;  %757 = vperm.xlu1 %1365, %v695_v21   ;;  %v341_v21 = vunpack.c.3.s8 %v321_v63  ;;  %v1248_v63 = vld [vmem:[#allocation3 + $0x8] sm:$0xff] }
  0x28   : > { %926 = vmatpush.bf16.msra.mxu2 %v1252_v59 }
  0x29   : > { %561 = vmatpush.bf16.msra.mxu0 %v1232_v26 }
  0x2a   : > { %1308 = vmatpush.bf16.msra.mxu3 %v1232_v26  ;;  %v371_v26 = vcvt.s32.f32 %v339_v20 }
  0x2b   : > { %610 = vmatpush.bf16.msra.mxu1 %v1569_v30  ;;  %762 = vperm.xlu2 %1366, %v696_v1  }
  0x2d   : > { %562 = vmatpush.bf16.msra.mxu0 %v1231_v35 }
  0x2e   : > { %767 = vperm.xlu0 %1364, %v697_v27   ;;  %1309 = vmatpush.bf16.msra.mxu3 %v1231_v35  ;;  %v373_v27 = vcvt.s32.f32 %v341_v21  ;;  %v323_v35 = vld [vmem:[%s1546_s14 + $0x20] sm:$0xff] }
  0x2f   : > { %611 = vmatpush.bf16.msra.mxu1 %v1578_v38  ;;  %782 = vperm.xlu1 %1365, %v700_v41   ;;  %v343_v37 = vunpack.c.0.s8 %v323_v35  ;;  %v347_v47 = vunpack.c.2.s8 %v323_v35  ;;  %v349_v48 = vunpack.c.3.s8 %v323_v35 }
  0x30   : > { %563 = vmatmul.bf16.vlgmr.msra.gmra.mxu0 %v391_v39  ;;  %v397_v32 = vpack.c.bf16 %v373_v27, %v371_v26  ;;  %v344_v39 = vunpack.c.0.s8 %v324_v36 }
  0x31   : > { %593 = vmatmul.bf16.vlgmr.msra.gmra.mxu3 %v403_v40  ;;  %v346_v40 = vunpack.c.1.s8 %v324_v36  ;;  %v375_v41 = vcvt.s32.f32 %v343_v37  ;;  %v379_v51 = vcvt.s32.f32 %v347_v47 }
  0x32   : > { %1310 = vmatpush.bf16.msrb.mxu3 %v1499_v2  ;;  %612 = vmatmul.bf16.vlgmr.msra.gmra.mxu1 %v392_v42  ;;  %v322_v2 = vld [vmem:[%s1546_s14 + $0x18] sm:$0xff] }
  0x33   : > { %v336_v7 = vunpack.c.0.s8 %v322_v2  ;;  %v338_v8 = vunpack.c.1.s8 %v322_v2  ;;  %v340_v24 = vunpack.c.2.s8 %v322_v2  ;;  %v342_v25 = vunpack.c.3.s8 %v322_v2 }
  0x34   : > { %v378_v44 = vcvt.s32.f32 %v346_v40 }
  0x35   : > { %v368_v14 = vcvt.s32.f32 %v336_v7  ;;  %v374_v31 = vcvt.s32.f32 %v342_v25 }
  0x36   : > { %772 = vperm.xlu0 %1364, %v698_v43   ;;  %1311 = vmatpush.bf16.msrb.mxu3 %v1510_v5  ;;  %v352_v5 = vunpack.c.0.s8 %v326_v0  ;;  %v376_v43 = vcvt.s32.f32 %v344_v39  ;;  %v1247_v0 = vld [vmem:[#allocation3] sm:$0xff] }
  0x37   : > { %777 = vperm.xlu1 %1365, %v699_v49   ;;  %v348_v49 = vunpack.c.2.s8 %v324_v36 }
  0x38   : > { %v384_v12 = vcvt.s32.f32 %v352_v5  ;;  %v400_v46 = vpack.c.bf16 %v378_v44, %v376_v43 }
  0x39   : > { %v380_v53 = vcvt.s32.f32 %v348_v49 }
  0x3a   : > { %1312 = vmatpush.bf16.msrb.mxu3 %v1521_v9  ;;  %v701_v9 = vld [vmem:[%s1491_s9 + $0x68] sm:$0xff]  ;;  %v404_v17 = vpack.c.bf16 %v386_v13, %v384_v12 }
  0x3b   : > { %787 = vperm.xlu2 %1366, %v701_v9   ;;  %v402_v58 = vpack.c.bf16 %v382_v54, %v380_v53 }
  0x3e   : > { %797 = vperm.xlu0 %1364, %v703_v52   ;;  %1313 = vmatpush.bf16.msrb.mxu3 %v1530_v11  ;;  %v369_v11 = vcvt.s32.f32 %v337_v4  ;;  %v381_v52 = vcvt.s32.f32 %v349_v48 }
  0x40   : > { %568 = vmatmul.bf16.gmra.mxu0 %v393_v60  ;;  %v395_v16 = vpack.c.bf16 %v369_v11, %v367_v10  ;;  %v401_v56 = vpack.c.bf16 %v381_v52, %v379_v51  ;;  %v1251_v60 = vld [vmem:[#allocation3 + $0x20] sm:$0xff] }
  0x41   : > { %598 = vmatmul.bf16.gmra.mxu3 %v405_v61  ;;  %927 = vmatpush.bf16.msra.mxu2 %v1251_v60  ;;  %v1250_v61 = vld [vmem:[#allocation3 + $0x18] sm:$0xff] }
  0x42   : > { %1314 = vmatpush.bf16.msrb.mxu3 %v1541_v15  ;;  %617 = vmatmul.bf16.gmra.mxu1 %v394_v62  ;;  %v370_v15 = vcvt.s32.f32 %v338_v8  ;;  %v1249_v62 = vld [vmem:[#allocation3 + $0x10] sm:$0xff]  ;;  %v1609_v8 = vld [vmem:[%s1710_s3] ss:$0 sm:$0xff] }
  0x44   : > { %v396_v18 = vpack.c.bf16 %v370_v15, %v368_v14 }
  0x45   : > { %928 = vmatpush.bf16.msra.mxu2 %v1250_v61 }
  0x46   : > { %1315 = vmatpush.bf16.msrb.mxu3 %v1557_v19  ;;  %v702_v19 = vld [vmem:[%s1491_s9 + $0x70] sm:$0xff] }
  0x47   : > { %792 = vperm.xlu2 %1366, %v702_v19  }
  0x49   : > { %929 = vmatpush.bf16.msra.mxu2 %v1249_v62 }
  0x4a   : > { %1316 = vmatpush.bf16.msrb.mxu3 %v1569_v30  ;;  %v372_v30 = vcvt.s32.f32 %v340_v24 }
  0x4c   : > { %v398_v34 = vpack.c.bf16 %v374_v31, %v372_v30 }
  0x4d   : > { %930 = vmatpush.bf16.msra.mxu2 %v1248_v63 }
  0x4e   : > { %1317 = vmatpush.bf16.msrb.mxu3 %v1578_v38  ;;  %v345_v38 = vunpack.c.1.s8 %v323_v35 }
  0x50   : > { %573 = vmatmul.bf16.gmra.mxu0 %v395_v16  ;;  %v377_v42 = vcvt.s32.f32 %v345_v38 }
  0x51   : > { %642 = vmatmul.bf16.vlgmr.msrb.gmra.mxu3 %v404_v17  ;;  %931 = vmatpush.bf16.msra.mxu2 %v1247_v0 }
  0x52   : > { %622 = vmatmul.bf16.gmra.mxu1 %v396_v18  ;;  %v399_v45 = vpack.c.bf16 %v377_v42, %v375_v41  ;;  %1318 = vmatpush.bf16.msra.mxu3 %v1254_v55 }
  0x56   : > { %1319 = vmatpush.bf16.msra.mxu3 %v1253_v57 }
  0x5a   : > { %1320 = vmatpush.bf16.msra.mxu3 %v1252_v59 }
  0x5e   : > { %1321 = vmatpush.bf16.msra.mxu3 %v1251_v60 }
  0x60   : > { %578 = vmatmul.bf16.gmra.mxu0 %v397_v32 }
  0x61   : > { %647 = vmatmul.bf16.gmra.mxu3 %v406_v33 }
  0x62   : > { %627 = vmatmul.bf16.gmra.mxu1 %v398_v34  ;;  %1322 = vmatpush.bf16.msra.mxu3 %v1250_v61 }
  0x66   : > { %1323 = vmatpush.bf16.msra.mxu3 %v1249_v62 }
  0x6a   : > { %1324 = vmatpush.bf16.msra.mxu3 %v1248_v63 }
  0x6e   : > { %1325 = vmatpush.bf16.msra.mxu3 %v1247_v0 }
  0x70   : > { %583 = vmatmul.bf16.gmra.mxu0 %v399_v45 }
  0x72   : > { %632 = vmatmul.bf16.gmra.mxu1 %v400_v46 }
  0x75   : > { %v1618_v21 = vpop.permute.xlu2 %742 }
  0x7d   : > { %v1623_v30 = vpop.permute.xlu2 %747 }
  0x80   : > { %588 = vmatmul.bf16.gmra.mxu0 %v401_v56 }
  0x82   : > { %637 = vmatmul.bf16.gmra.mxu1 %v402_v58 }
  0x85   : > { %v1632_v43 = vpop.permute.xlu2 %762 }
  0x88   : > { %v1603_v2 = vpop.permute.xlu0 %722 }
  0x89   : > { %v1615_v14 = vpop.permute.xlu1 %732 }
  0x90   : > { %v1611_v11 = vpop.permute.xlu0 %727 }
  0x91   : > { %v1620_v25 = vpop.permute.xlu1 %737 }
  0x95   : > { %v1643_v58 = vpop.permute.xlu2 %787 }
  0x98   : > { %v1628_v39 = vpop.permute.xlu0 %752 }
  0x99   : > { %v1630_v40 = vpop.permute.xlu1 %757 }
  0xa0   : > { %v1635_v50 = vpop.permute.xlu0 %767 }
  0xa1   : > { %v1637_v51 = vpop.permute.xlu1 %782 }
  0xad   : > { %v564_v1 = vpop.f32.mrf.mxu0 }
  0xaf   : > { %v613_v3 = vpop.f32.mrf.mxu1 }
  0xb0   : > { %v614_v4 = vadd.f32 %v613_v3, %v564_v1 }
  0xb2   : > { %v800_v6 = vmul.f32 %v1603_v2, %v614_v4 }
  0xb4   : > { %v594_v5 = vpop.f32.mrf.mxu3  ;;  %v820_v13 = vadd.f32 %v1609_v8, %v800_v6 }
  0xb5   : > { %v566_v7 = vpop.f32.mrf.mxu0 }
  0xb6   : > { %v836_v18 = vmax.f32 %v820_v13, 0.0 }
  0xb7   : > { %v615_v9 = vpop.f32.mrf.mxu1 }
  0xb8   : > { %v616_v10 = vadd.f32 %v615_v9, %v566_v7  ;;  %v1648_v7 = vpop.permute.xlu0 %772 }
  0xba   : > { %v801_v12 = vmul.f32 %v1611_v11, %v616_v10 }
  0xbc   : > { %v596_v15 = vpop.f32.mrf.mxu3  ;;  %v821_v16 = vadd.f32 %v1609_v8, %v801_v12 }
  0xbd   : > { %v569_v17 = vpop.f32.mrf.mxu0 }
  0xbe   : > { %v837_v19 = vmax.f32 %v821_v16, 0.0 }
  0xbf   : > { %v618_v20 = vpop.f32.mrf.mxu1 }
  0xc0   : > { %v852_v22 = vpack.c.bf16 %v837_v19, %v836_v18  ;;  %v619_v23 = vadd.f32 %v618_v20, %v569_v17  ;;  %v1651_v18 = vpop.permute.xlu2 %792 }
  0xc2   : > { %932 = vmatmul.bf16.vlgmr.msra.gmra.mxu2 %v852_v22  ;;  %v802_v26 = vmul.f32 %v1615_v14, %v619_v23 }
  0xc4   : > { %v599_v24 = vpop.f32.mrf.mxu3  ;;  %v822_v32 = vadd.f32 %v1609_v8, %v802_v26 }
  0xc5   : > { %v571_v27 = vpop.f32.mrf.mxu0 }
  0xc6   : > { %v838_v36 = vmax.f32 %v822_v32, 0.0 }
  0xc7   : > { %v620_v28 = vpop.f32.mrf.mxu1 }
  0xc8   : > { %v621_v29 = vadd.f32 %v620_v28, %v571_v27  ;;  %v1657_v28 = vpop.permute.xlu0 %797 }
  0xca   : > { %v803_v31 = vmul.f32 %v1620_v25, %v621_v29 }
  0xcc   : > { %v601_v33 = vpop.f32.mrf.mxu3  ;;  %v823_v34 = vadd.f32 %v1609_v8, %v803_v31 }
  0xcd   : > { %v574_v35 = vpop.f32.mrf.mxu0 }
  0xce   : > { %v839_v37 = vmax.f32 %v823_v34, 0.0 }
  0xcf   : > { %v623_v38 = vpop.f32.mrf.mxu1 }
  0xd0   : > { %v853_v41 = vpack.c.bf16 %v839_v37, %v838_v36  ;;  %v624_v42 = vadd.f32 %v623_v38, %v574_v35 }
  0xd2   : > { %937 = vmatmul.bf16.gmra.mxu2 %v853_v41  ;;  %v804_v45 = vmul.f32 %v1618_v21, %v624_v42 }
  0xd4   : > { %v643_v44 = vpop.f32.mrf.mxu3  ;;  %v824_v53 = vadd.f32 %v1609_v8, %v804_v45 }
  0xd5   : > { %v576_v46 = vpop.f32.mrf.mxu0  ;;  %v644_v47 = vadd.f32 %v643_v44, %v594_v5 }
  0xd6   : > { %v840_v60 = vmax.f32 %v824_v53, 0.0 }
  0xd7   : > { %v625_v48 = vpop.f32.mrf.mxu1  ;;  %v812_v54 = vmul.f32 %v1637_v51, %v644_v47 }
  0xd8   : > { %v626_v49 = vadd.f32 %v625_v48, %v576_v46 }
  0xd9   : > { %v832_v62 = vadd.f32 %v1609_v8, %v812_v54 }
  0xda   : > { %v805_v52 = vmul.f32 %v1623_v30, %v626_v49 }
  0xdb   : > { %v848_v5 = vmax.f32 %v832_v62, 0.0 }
  0xdc   : > { %v645_v55 = vpop.f32.mrf.mxu3  ;;  %v825_v56 = vadd.f32 %v1609_v8, %v805_v52 }
  0xdd   : > { %v646_v57 = vadd.f32 %v645_v55, %v596_v15  ;;  %v579_v59 = vpop.f32.mrf.mxu0 }
  0xde   : > { %v841_v61 = vmax.f32 %v825_v56, 0.0 }
  0xdf   : > { %v813_v63 = vmul.f32 %v1643_v58, %v646_v57  ;;  %v628_v0 = vpop.f32.mrf.mxu1 }
  0xe0   : > { %v854_v1 = vpack.c.bf16 %v841_v61, %v840_v60  ;;  %v629_v4 = vadd.f32 %v628_v0, %v579_v59  ;;  %v778_v0 = vpop.permute.xlu1 %777 }
  0xe1   : > { %v833_v3 = vadd.f32 %v1609_v8, %v813_v63 }
  0xe2   : > { %942 = vmatmul.bf16.gmra.mxu2 %v854_v1  ;;  %v806_v12 = vmul.f32 %v1628_v39, %v629_v4 }
  0xe3   : > { %v849_v6 = vmax.f32 %v833_v3, 0.0 }
  0xe4   : > { %v648_v9 = vpop.f32.mrf.mxu3  ;;  %v826_v20 = vadd.f32 %v1609_v8, %v806_v12 }
  0xe5   : > { %v858_v10 = vpack.c.bf16 %v849_v6, %v848_v5  ;;  %v581_v13 = vpop.f32.mrf.mxu0  ;;  %v649_v15 = vadd.f32 %v648_v9, %v599_v24 }
  0xe6   : > { %v842_v31 = vmax.f32 %v826_v20, 0.0 }
  0xe7   : > { %v630_v16 = vpop.f32.mrf.mxu1  ;;  %962 = vmatmul.bf16.vlgmr.msra.gmra.mxu3 %v858_v10  ;;  %v814_v22 = vmul.f32 %v1651_v18, %v649_v15 }
  0xe8   : > { %v631_v17 = vadd.f32 %v630_v16, %v581_v13 }
  0xe9   : > { %v834_v35 = vadd.f32 %v1609_v8, %v814_v22 }
  0xea   : > { %v807_v19 = vmul.f32 %v1630_v40, %v631_v17 }
  0xeb   : > { %v850_v41 = vmax.f32 %v834_v35, 0.0 }
  0xec   : > { %v650_v23 = vpop.f32.mrf.mxu3  ;;  %v827_v26 = vadd.f32 %v1609_v8, %v807_v19 }
  0xed   : > { %v651_v27 = vadd.f32 %v650_v23, %v601_v33  ;;  %v584_v29 = vpop.f32.mrf.mxu0 }
  0xee   : > { %v843_v24 = vmax.f32 %v827_v26, 0.0 }
  0xef   : > { %v815_v32 = vmul.f32 %v1657_v28, %v651_v27  ;;  %v633_v34 = vpop.f32.mrf.mxu1 }
  0xf0   : > { %v855_v36 = vpack.c.bf16 %v843_v24, %v842_v31  ;;  %v634_v38 = vadd.f32 %v633_v34, %v584_v29 }
  0xf1   : > { %v835_v37 = vadd.f32 %v1609_v8, %v815_v32 }
  0xf2   : > { %947 = vmatmul.bf16.gmra.mxu2 %v855_v36  ;;  %v808_v33 = vmul.f32 %v1632_v43, %v634_v38 }
  0xf3   : > { %v851_v42 = vmax.f32 %v835_v37, 0.0 }
  0xf4   : > { %v828_v49 = vadd.f32 %v1609_v8, %v808_v33 }
  0xf5   : > { %v859_v44 = vpack.c.bf16 %v851_v42, %v850_v41  ;;  %v586_v45 = vpop.f32.mrf.mxu0 }
  0xf6   : > { %v844_v54 = vmax.f32 %v828_v49, 0.0 }
  0xf7   : > { %v635_v46 = vpop.f32.mrf.mxu1  ;;  %967 = vmatmul.bf16.gmra.mxu3 %v859_v44 }
  0xf8   : > { %v636_v47 = vadd.f32 %v635_v46, %v586_v45 }
  0xfa   : > { %v809_v48 = vmul.f32 %v1635_v50, %v636_v47 }
  0xfc   : > { %v829_v52 = vadd.f32 %v1609_v8, %v809_v48 }
  0xfd   : > { %v589_v53 = vpop.f32.mrf.mxu0 }
  0xfe   : > { %v845_v55 = vmax.f32 %v829_v52, 0.0 }
  0xff   : > { %v638_v56 = vpop.f32.mrf.mxu1 }
 0x100   : > { %v856_v57 = vpack.c.bf16 %v845_v55, %v844_v54  ;;  %v639_v59 = vadd.f32 %v638_v56, %v589_v53 }
 0x102   : > { %952 = vmatmul.bf16.gmra.mxu2 %v856_v57  ;;  %v810_v60 = vmul.f32 %v1648_v7, %v639_v59 }
 0x104   : > { %v830_v3 = vadd.f32 %v1609_v8, %v810_v60 }
 0x105   : > { %v591_v61 = vpop.f32.mrf.mxu0 }
 0x106   : > { %v846_v5 = vmax.f32 %v830_v3, 0.0 }
 0x107   : > { %v640_v62 = vpop.f32.mrf.mxu1 }
 0x108   : > { %v641_v63 = vadd.f32 %v640_v62, %v591_v61 }
 0x10a   : > { %v811_v1 = vmul.f32 %v778_v0, %v641_v63 }
 0x10c   : > { %v831_v4 = vadd.f32 %v1609_v8, %v811_v1 }
 0x10e   : > { %v847_v6 = vmax.f32 %v831_v4, 0.0 }
 0x110   : > { %v857_v9 = vpack.c.bf16 %v847_v6, %v846_v5 }
 0x112   : > { %957 = vmatmul.bf16.gmra.mxu2 %v857_v9 }
 0x145   : > { %v933_v10 = vpop.f32.mrf.mxu2 }
 0x146   : > { %v973_v13 = vmul.f32 %v933_v10, %v1603_v2 }
 0x14d   : > { %v935_v12 = vpop.f32.mrf.mxu2 }
 0x14e   : > { %v974_v15 = vmul.f32 %v935_v12, %v1611_v11 }
 0x150   : > { %v1258_v8 = vpack.c.bf16 %v974_v15, %v973_v13 }
 0x152   : > { %1259 = vst [vmem:[%s1675_s11] sm:$0xff] %v1258_v8  }
 0x155   : > { %v938_v16 = vpop.f32.mrf.mxu2 }
 0x156   : > { %v975_v19 = vmul.f32 %v938_v16, %v1615_v14 }
 0x15d   : > { %v940_v17 = vpop.f32.mrf.mxu2 }
 0x15e   : > { %v976_v20 = vmul.f32 %v940_v17, %v1620_v25 }
 0x160   : > { %v1263_v2 = vpack.c.bf16 %v976_v20, %v975_v19 }
 0x162   : > { %1295 = vst [vmem:[%s1675_s11 + $0x8] sm:$0xff] %v1263_v2  }
 0x165   : > { %v943_v11 = vpop.f32.mrf.mxu2 }
 0x166   : > { %v977_v26 = vmul.f32 %v943_v11, %v1618_v21 }
 0x16a   : > { %v963_v22 = vpop.f32.mrf.mxu3 }
 0x16b   : > { %v985_v24 = vmul.f32 %v963_v22, %v1637_v51 }
 0x16d   : > { %v945_v23 = vpop.f32.mrf.mxu2 }
 0x16e   : > { %v978_v27 = vmul.f32 %v945_v23, %v1623_v30 }
 0x170   : > { %v1268_v29 = vpack.c.bf16 %v978_v27, %v977_v26 }
 0x172   : > { %1296 = vst [vmem:[%s1675_s11 + $0x10] sm:$0xff] %v1268_v29   ;;  %v965_v31 = vpop.f32.mrf.mxu3 }
 0x173   : > { %v986_v14 = vmul.f32 %v965_v31, %v1643_v58 }
 0x175   : > { %v1288_v32 = vpack.c.bf16 %v986_v14, %v985_v24  ;;  %v948_v25 = vpop.f32.mrf.mxu2 }
 0x176   : > { %v979_v36 = vmul.f32 %v948_v25, %v1628_v39 }
 0x177   : > { %1300 = vst [vmem:[%s1675_s11 + $0x30] sm:$0xff] %v1288_v32  }
 0x17a   : > { %v968_v34 = vpop.f32.mrf.mxu3 }
 0x17b   : > { %v987_v38 = vmul.f32 %v968_v34, %v1651_v18 }
 0x17d   : > { %v950_v35 = vpop.f32.mrf.mxu2 }
 0x17e   : > { %v980_v21 = vmul.f32 %v950_v35, %v1630_v40 }
 0x180   : > { %v1273_v37 = vpack.c.bf16 %v980_v21, %v979_v36 }
 0x182   : > { %1297 = vst [vmem:[%s1675_s11 + $0x18] sm:$0xff] %v1273_v37   ;;  %v970_v30 = vpop.f32.mrf.mxu3 }
 0x183   : > { %v988_v51 = vmul.f32 %v970_v30, %v1657_v28 }
 0x185   : > { %v1293_v41 = vpack.c.bf16 %v988_v51, %v987_v38  ;;  %v953_v58 = vpop.f32.mrf.mxu2 }
 0x186   : > { %v981_v44 = vmul.f32 %v953_v58, %v1632_v43 }
 0x187   : > { %1301 = vst [vmem:[%s1675_s11 + $0x38] sm:$0xff] %v1293_v41  }
 0x18d   : > { %v955_v42 = vpop.f32.mrf.mxu2 }
 0x18e   : > { %v982_v33 = vmul.f32 %v955_v42, %v1635_v50 }
 0x190   : > { %v1278_v45 = vpack.c.bf16 %v982_v33, %v981_v44 }
 0x192   : > { %1298 = vst [vmem:[%s1675_s11 + $0x20] sm:$0xff] %v1278_v45  }
 0x195   : > { %v958_v39 = vpop.f32.mrf.mxu2 }
 0x196   : > { %v983_v46 = vmul.f32 %v958_v39, %v1648_v7 }
 0x19d   : > { %v960_v40 = vpop.f32.mrf.mxu2 }
 0x19e   : > { %v984_v47 = vmul.f32 %v960_v40, %v778_v0 }
 0x1a0   : > { %v1283_v48 = vpack.c.bf16 %v984_v47, %v983_v46 }
 0x1a2   : > { %1299 = vst [vmem:[%s1675_s11 + $0x28] sm:$0xff] %v1283_v48  }
 0x1a3 PF: > { %s16_s20 = sadd.s32 1, %s1424_s20   ;;  %s1713_s18 = smov %s1420_s19 }
 0x1a4   : > { %p13_p9 = scmp.ge.s32.totalorder %s16_s20, 4   ;;  %s1714_s19 = smov %s1716_s22 }
 0x1a6   :  { %15 = sbr.rel (!%p13_p9) target bundleno = 2 (0x2), region = 87 }
 0x1ab   :  { %1043 = vsyncpa [#allocation4], 1 }
 0x1ac   :  { %1045 = vsyncpa [#allocation4 + $0x1], 1 }

</bundles_post_ra>
